<compile_context>
chip_gen: v7x
topology: tpu7x:2x2x1
jax: 0.10.0
libtpu: 0.0.40
codegen_flags: <defaults>
</compile_context>

<pallas_src>
import functools

import jax
import jax.numpy as jnp
from jax import lax
from jax.experimental import pallas as pl
from jax.experimental.pallas import tpu as pltpu


def _round_up(x, m):
    return (x + m - 1) // m * m


# ----------------------------------------------------------------------------
# Feature probe: can we single-buffer a grid-invariant input via Buffered(1)?
# ----------------------------------------------------------------------------
def _probe_kernel(x_ref, o_ref):
    o_ref[...] = x_ref[...]


def _probe_buffered_support():
    try:
        spec = pl.BlockSpec((8, 128), lambda i: (0, 0), pipeline_mode=pl.Buffered(1))
    except Exception:
        return False
    try:
        f = pl.pallas_call(
            _probe_kernel,
            out_shape=jax.ShapeDtypeStruct((8, 128), jnp.float32),
            grid=(1,),
            in_specs=[spec],
            out_specs=pl.BlockSpec((8, 128), lambda i: (0, 0)),
            compiler_params=pltpu.CompilerParams(dimension_semantics=("parallel",)),
        )
        jax.jit(f).lower(jax.ShapeDtypeStruct((8, 128), jnp.float32)).compile()
        return True
    except Exception:
        return False


_HAS_BUFFERED = _probe_buffered_support()


def _const_spec(block_shape, index_map):
    """BlockSpec for a grid-invariant input: single-buffer it when supported."""
    if _HAS_BUFFERED:
        return pl.BlockSpec(block_shape, index_map, pipeline_mode=pl.Buffered(1))
    return pl.BlockSpec(block_shape, index_map)


# ----------------------------------------------------------------------------
# VMEM budgeting helpers
# ----------------------------------------------------------------------------
def _vmem_capacity_bytes(default=64 << 20):
    try:
        cap = getattr(pltpu.get_tpu_info(), "vmem_capacity_bytes", None)
        if cap:
            return int(cap)
    except Exception:
        pass
    return default  # conservative (v7x)


def _vmem_limit(budget_bytes, vmem_cap):
    want = int(budget_bytes * 1.5) + (4 << 20)
    want = max(want, 32 << 20)
    return int(min(want, vmem_cap, 128 << 20))


def _choose_tm(n_pad, d_pad, nv_itemsize, vmem_cap):
    """Largest pass-2 row tile whose working set fits scoped VMEM.

    Budget (conservative, nv assumed double-buffered): 2*nv_all + 2 output-strip
    buffers + ~7 strip-sized live intermediates in the top-k loop.  Prefers >= 2
    grid steps so both v7x TensorCores get a strip.
    """
    usable = int(vmem_cap * 0.7)
    nv_all = 2 * n_pad * d_pad * nv_itemsize
    cands = [t for t in (256, 128, 64, 32, 16, 8) if n_pad % t == 0]
    for require_two_steps in (True, False):
        for tm in cands:
            fits = nv_all + 9 * tm * n_pad * 4 <= usable
            if fits and (not require_two_steps or n_pad // tm >= 2):
                return tm
    return cands[-1]


# ----------------------------------------------------------------------------
# Kernels
# ----------------------------------------------------------------------------
def _nodevec_kernel(x_ref, w_ref, b_ref, nv_ref, *, alpha):
    # nodevec = tanh(alpha * (x @ W.T + b)), PyTorch op order.
    y = jnp.dot(x_ref[...], w_ref[...], preferred_element_type=jnp.float32)
    nv_ref[...] = jnp.tanh(alpha * (y + b_ref[...])).astype(nv_ref.dtype)


def _adj_topk_kernel(nv_ref, o_ref, *, alpha, k, n_real, tm, unroll):
    # nv_ref: (N_pad, D_pad) resident nodevecs (single pipelined input)
    # o_ref : (TM, N_pad)    masked adjacency strip for rows [i*TM, (i+1)*TM)
    i = pl.program_id(0)
    row0 = pl.multiple_of(i * tm, tm)
    nv_rows = nv_ref[pl.ds(row0, tm), :]           # this strip's query rows
    nv_all = nv_ref[...]

    # a = nv_rows @ nv_all.T without an XLU transpose: contract feature axes.
    a = lax.dot_general(
        nv_rows, nv_all,
        dimension_numbers=(((1,), (1,)), ((), ())),
        preferred_element_type=jnp.float32,
    )                                              # (TM, N_pad) f32
    adj = jnp.maximum(jnp.tanh(alpha * a), 0.0)

    n_pad = adj.shape[1]
    col_ids = lax.broadcasted_iota(jnp.int32, (tm, n_pad), 1)
    neg_inf = jnp.float32(-jnp.inf)

    # Padded node columns must never win top-k: push below real (>= 0) values.
    work0 = jnp.where(col_ids < n_real, adj, -1.0)

    # Exact torch.topk-style selection: k times pick the row max (lowest column
    # index on ties) and knock it to -inf.  Only `work` is carried -- no
    # (TM, N_pad) mask array is ever materialised.
    def body(_, work):
        rowmax = jnp.max(work, axis=1, keepdims=True)
        sel_col = jnp.min(
            jnp.where(work == rowmax, col_ids, n_pad), axis=1, keepdims=True)
        return jnp.where(col_ids == sel_col, neg_inf, work)

    work = lax.fori_loop(0, k, body, work0, unroll=unroll)

    # Selected entries are exactly the knocked-out ones.
    o_ref[...] = jnp.where(work == neg_inf, adj, 0.0)


# ----------------------------------------------------------------------------
# Wrapper
# ----------------------------------------------------------------------------
@functools.partial(jax.jit, static_argnames=("alpha", "k", "tm", "nv_dtype"))
def graph_undirected_forward(idx, emb_weight, lin_w, lin_b, *, alpha, k,
                             tm=None, nv_dtype="float32"):
    """graph_undirected.forward (static_feat=None).

    idx: (N,) int32; emb_weight: (nnodes, dim); lin_w: (dim, dim) in PyTorch
    (out, in) layout; lin_b: (dim,).  Returns the (N, N) masked adjacency.
    """
    n = int(idx.shape[0])
    d = int(emb_weight.shape[1])
    alpha = float(alpha)
    k = int(k)
    assert 0 < k <= n, "top-k requires 0 < k <= number of queried nodes"

    nv_dt = jnp.dtype(nv_dtype)          # bfloat16 halves resident nv on v6e/v7x
    n_pad = _round_up(n, 128)            # lane-dense adjacency columns
    d_pad = _round_up(d, 128)            # full-width MXU contraction

    vmem_cap = _vmem_capacity_bytes()
    if tm is None:
        tm = _choose_tm(n_pad, d_pad, nv_dt.itemsize, vmem_cap)
    tm = min(int(tm), n_pad)
    assert n_pad % tm == 0

    tm1 = max(t for t in (1024, 512, 256, 128) if n_pad % t == 0)  # fat pass-1 tile

    # --- glue in plain JAX: embedding gather + zero padding --------------------
    x = emb_weight[idx].astype(jnp.float32)
    w_t = lin_w.astype(jnp.float32).T                       # y = x @ W.T + b
    x_p = jnp.zeros((n_pad, d_pad), jnp.float32).at[:n, :d].set(x)
    w_p = jnp.zeros((d_pad, d_pad), jnp.float32).at[:d, :d].set(w_t)
    b_p = jnp.zeros((1, d_pad), jnp.float32).at[0, :d].set(lin_b.astype(jnp.float32))

    # --- pass 1: nodevec = tanh(alpha * lin1(emb)) ------------------------------
    budget1 = (2 * d_pad * d_pad * 4 + 2 * d_pad * 4
               + 2 * tm1 * d_pad * 4 + 2 * tm1 * d_pad * nv_dt.itemsize
               + 4 * tm1 * d_pad * 4)
    nv = pl.pallas_call(
        functools.partial(_nodevec_kernel, alpha=alpha),
        out_shape=jax.ShapeDtypeStruct((n_pad, d_pad), nv_dt),
        grid=(n_pad // tm1,),
        in_specs=[
            pl.BlockSpec((tm1, d_pad), lambda i: (i, 0)),
            _const_spec((d_pad, d_pad), lambda i: (0, 0)),
            _const_spec((1, d_pad), lambda i: (0, 0)),
        ],
        out_specs=pl.BlockSpec((tm1, d_pad), lambda i: (i, 0)),
        compiler_params=pltpu.CompilerParams(
            dimension_semantics=("parallel",),
            vmem_limit_bytes=_vmem_limit(budget1, vmem_cap)),
    )(x_p, w_p, b_p)

    # --- pass 2: adjacency strips + exact top-k masking -------------------------
    nv_bufs = 1 if _HAS_BUFFERED else 2
    budget2 = nv_bufs * n_pad * d_pad * nv_dt.itemsize + 9 * tm * n_pad * 4
    unroll = True if k <= 8 else 4
    adj_p = pl.pallas_call(
        functools.partial(_adj_topk_kernel, alpha=alpha, k=k, n_real=n,
                          tm=tm, unroll=unroll),
        out_shape=jax.ShapeDtypeStruct((n_pad, n_pad), jnp.float32),
        grid=(n_pad // tm,),
        in_specs=[_const_spec((n_pad, d_pad), lambda i: (0, 0))],
        out_specs=pl.BlockSpec((tm, n_pad), lambda i: (i, 0)),
        compiler_params=pltpu.CompilerParams(
            dimension_semantics=("parallel",),
            vmem_limit_bytes=_vmem_limit(budget2, vmem_cap)),
    )(nv)

    return adj_p[:n, :n]


if __name__ == "__main__":
    nnodes, dim, k, alpha = 16, 32, 4, 3.0

    key = jax.random.PRNGKey(0)
    k_emb, k_w, k_b = jax.random.split(key, 3)

    # Deterministic synthetic parameters (shapes follow nn.Embedding / nn.Linear).
    emb_weight = jax.random.normal(k_emb, (nnodes, dim), dtype=jnp.float32)
    bound = 1.0 / (dim ** 0.5)
    lin_w = jax.random.uniform(k_w, (dim, dim), jnp.float32, -bound, bound)
    lin_b = jax.random.uniform(k_b, (dim,), jnp.float32, -bound, bound)

    idx = jnp.arange(8, dtype=jnp.int32)          # N = 8 queried nodes
    n = int(idx.shape[0])

    out = graph_undirected_forward(idx, emb_weight, lin_w, lin_b, alpha=alpha, k=k)
    out = jax.block_until_ready(out)
    assert out.shape == (n, n)

    # --- pure-JAX reference (same math, high-precision matmuls) -----------------
    x = emb_weight[idx]
    nv_ref = jnp.tanh(alpha * (jnp.dot(x, lin_w.T, precision=lax.Precision.HIGHEST)
                               + lin_b))
    a_ref = jnp.dot(nv_ref, nv_ref.T, precision=lax.Precision.HIGHEST)
    adj_ref = jnp.maximum(jnp.tanh(alpha * a_ref), 0.0)
    topk_vals, _ = lax.top_k(adj_ref, k)

    kept = out > 0
    # each row keeps at most k nonzero entries (relu may zero selected slots)
    assert int(kept.sum(axis=1).max()) <= k
    # kept adjacency values match the reference adjacency at those positions
    kept_err = float(jnp.where(kept, jnp.abs(out - adj_ref), 0.0).max())
    assert kept_err < 1e-2, f"kept adjacency values mismatch: {kept_err}"
    # every kept entry is at least as large as the row's k-th reference value
    # (robust to tie-order differences between implementations)
    kth = topk_vals[:, -1:]
    assert bool(jnp.all(jnp.where(kept, out >= kth - 2e-2, True))), \
        "top-k selection mismatch"

    print("KERNEL_OK")
</pallas_src>

<mosaic_0001>
module attributes {stable_mosaic.version = 11 : i64} {
  func.func @_nodevec_kernel(%arg0: i32, %arg1: memref<128x128xf32, #tpu.memory_space<vmem>>, %arg2: memref<128x128xf32, #tpu.memory_space<vmem>>, %arg3: memref<1x128xf32, #tpu.memory_space<vmem>>, %arg4: memref<128x128xf32, #tpu.memory_space<vmem>>) attributes {dimension_semantics = [#tpu.dimension_semantics<parallel>], iteration_bounds = array<i64: 1>, scalar_prefetch = 0 : i64, scratch_operands = 0 : i64, tpu.core_type = #tpu.core_type<tc>, window_params = [{transform_indices = @transform_0, window_bounds = array<i64: 128, 128>}, {pipeline_mode = #tpu.pipeline_mode<synchronous>, transform_indices = @transform_1, window_bounds = array<i64: 128, 128>}, {pipeline_mode = #tpu.pipeline_mode<synchronous>, transform_indices = @transform_2, window_bounds = array<i64: 1, 128>}, {transform_indices = @transform_3, window_bounds = array<i64: 128, 128>}]} {
    %c0 = arith.constant 0 : index
    %c0_0 = arith.constant 0 : index
    %0 = vector.load %arg1[%c0, %c0_0] : memref<128x128xf32, #tpu.memory_space<vmem>>, vector<128x128xf32>
    %c0_1 = arith.constant 0 : index
    %c0_2 = arith.constant 0 : index
    %1 = vector.load %arg2[%c0_1, %c0_2] : memref<128x128xf32, #tpu.memory_space<vmem>>, vector<128x128xf32>
    %cst = arith.constant dense<0.000000e+00> : vector<128x128xf32>
    %2 = tpu.matmul %0, %1, %cst {dimension_numbers = #tpu.dot_dimension_numbers<[1], [0], [0], [1], [0, 0, 1, 1], [], []>} : vector<128x128xf32>, vector<128x128xf32>, vector<128x128xf32> -> vector<128x128xf32>
    %c0_3 = arith.constant 0 : index
    %c0_4 = arith.constant 0 : index
    %3 = vector.load %arg3[%c0_3, %c0_4] : memref<1x128xf32, #tpu.memory_space<vmem>>, vector<1x128xf32>
    %4 = vector.broadcast %3 : vector<1x128xf32> to vector<128x128xf32>
    %5 = arith.addf %2, %4 : vector<128x128xf32>
    %cst_5 = arith.constant 3.000000e+00 : f32
    %6 = vector.broadcast %cst_5 : f32 to vector<128x128xf32>
    %7 = arith.mulf %6, %5 : vector<128x128xf32>
    %8 = math.tanh %7 : vector<128x128xf32>
    %c0_6 = arith.constant 0 : index
    %c0_7 = arith.constant 0 : index
    %9 = vector.load %arg4[%c0_6, %c0_7] : memref<128x128xf32, #tpu.memory_space<vmem>>, vector<128x128xf32>
    tpu.vector_store %arg4[%c0_6, %c0_7], %8 {strides = array<i32>} : memref<128x128xf32, #tpu.memory_space<vmem>>, vector<128x128xf32>,
    return
  }
  func.func @transform_0(%arg0: i32) -> (i32, i32) {
    %c0_i32 = arith.constant 0 : i32
    %c0_i32_0 = arith.constant 0 : i32
    return %arg0, %c0_i32 : i32, i32
  }
  func.func @transform_1(%arg0: i32) -> (i32, i32) {
    %c0_i32 = arith.constant 0 : i32
    %c0_i32_0 = arith.constant 0 : i32
    %c0_i32_1 = arith.constant 0 : i32
    return %c0_i32, %c0_i32_0 : i32, i32
  }
  func.func @transform_2(%arg0: i32) -> (i32, i32) {
    %c0_i32 = arith.constant 0 : i32
    %c0_i32_0 = arith.constant 0 : i32
    %c0_i32_1 = arith.constant 0 : i32
    return %c0_i32, %c0_i32_0 : i32, i32
  }
  func.func @transform_3(%arg0: i32) -> (i32, i32) {
    %c0_i32 = arith.constant 0 : i32
    %c0_i32_0 = arith.constant 0 : i32
    return %arg0, %c0_i32 : i32, i32
  }
}

module attributes {stable_mosaic.version = 11 : i64} {
  func.func @_adj_topk_kernel(%arg0: i32, %arg1: memref<128x128xf32, #tpu.memory_space<vmem>>, %arg2: memref<64x128xf32, #tpu.memory_space<vmem>>) attributes {dimension_semantics = [#tpu.dimension_semantics<parallel>], iteration_bounds = array<i64: 2>, scalar_prefetch = 0 : i64, scratch_operands = 0 : i64, tpu.core_type = #tpu.core_type<tc>, window_params = [{pipeline_mode = #tpu.pipeline_mode<synchronous>, transform_indices = @transform_0, window_bounds = array<i64: 128, 128>}, {transform_indices = @transform_1, window_bounds = array<i64: 64, 128>}]} {
    %c64_i32 = arith.constant 64 : i32
    %0 = arith.muli %arg0, %c64_i32 : i32
    %1 = tpu.assume_multiple %0, 64 : i32
    %2 = arith.index_cast %1 : i32 to index
    %c0 = arith.constant 0 : index
    %3 = vector.load %arg1[%2, %c0] : memref<128x128xf32, #tpu.memory_space<vmem>>, vector<64x128xf32>
    %c0_0 = arith.constant 0 : index
    %c0_1 = arith.constant 0 : index
    %4 = vector.load %arg1[%c0_0, %c0_1] : memref<128x128xf32, #tpu.memory_space<vmem>>, vector<128x128xf32>
    %cst = arith.constant dense<0.000000e+00> : vector<64x128xf32>
    %5 = tpu.matmul %3, %4, %cst {dimension_numbers = #tpu.dot_dimension_numbers<[1], [1], [0], [0], [0, 0, 1, 0], [], []>} : vector<64x128xf32>, vector<128x128xf32>, vector<64x128xf32> -> vector<64x128xf32>
    %cst_2 = arith.constant 3.000000e+00 : f32
    %6 = vector.broadcast %cst_2 : f32 to vector<64x128xf32>
    %7 = arith.mulf %6, %5 : vector<64x128xf32>
    %8 = math.tanh %7 : vector<64x128xf32>
    %cst_3 = arith.constant 0.000000e+00 : f32
    %9 = vector.broadcast %cst_3 : f32 to vector<64x128xf32>
    %10 = arith.maximumf %8, %9 : vector<64x128xf32>
    %11 = tpu.iota {dimensions = array<i32: 1>} : vector<64x128xi32>
    %c8_i32 = arith.constant 8 : i32
    %12 = vector.broadcast %c8_i32 : i32 to vector<64x128xi32>
    %13 = arith.cmpi slt, %11, %12 : vector<64x128xi32>
    %cst_4 = arith.constant -1.000000e+00 : f32
    %14 = vector.broadcast %cst_4 : f32 to vector<64x128xf32>
    %15 = arith.select %13, %10, %14 : vector<64x128xi1>, vector<64x128xf32>
    %cst_5 = arith.constant 0xFF800000 : f32
    %c0_i32 = arith.constant 0 : i32
    %cst_6 = arith.constant dense<0xFF800000> : vector<64xf32>
    %16 = vector.multi_reduction <maximumf>, %15, %cst_6 [1] : vector<64x128xf32> to vector<64xf32>
    %17 = vector.shape_cast %16 : vector<64xf32> to vector<64x1xf32>
    %18 = vector.broadcast %17 : vector<64x1xf32> to vector<64x128xf32>
    %19 = arith.cmpf oeq, %15, %18 : vector<64x128xf32>
    %c128_i32 = arith.constant 128 : i32
    %20 = vector.broadcast %c128_i32 : i32 to vector<64x128xi32>
    %21 = arith.select %19, %11, %20 : vector<64x128xi1>, vector<64x128xi32>
    %cst_7 = arith.constant dense<2147483647> : vector<64xi32>
    %22 = vector.multi_reduction <minsi>, %21, %cst_7 [1] : vector<64x128xi32> to vector<64xi32>
    %23 = vector.shape_cast %22 : vector<64xi32> to vector<64x1xi32>
    %24 = vector.broadcast %23 : vector<64x1xi32> to vector<64x128xi32>
    %25 = arith.cmpi eq, %11, %24 : vector<64x128xi32>
    %26 = vector.broadcast %cst_5 : f32 to vector<64x128xf32>
    %27 = arith.select %25, %26, %15 : vector<64x128xi1>, vector<64x128xf32>
    %c1_i32 = arith.constant 1 : i32
    %cst_8 = arith.constant dense<0xFF800000> : vector<64xf32>
    %28 = vector.multi_reduction <maximumf>, %27, %cst_8 [1] : vector<64x128xf32> to vector<64xf32>
    %29 = vector.shape_cast %28 : vector<64xf32> to vector<64x1xf32>
    %30 = vector.broadcast %29 : vector<64x1xf32> to vector<64x128xf32>
    %31 = arith.cmpf oeq, %27, %30 : vector<64x128xf32>
    %c128_i32_9 = arith.constant 128 : i32
    %32 = vector.broadcast %c128_i32_9 : i32 to vector<64x128xi32>
    %33 = arith.select %31, %11, %32 : vector<64x128xi1>, vector<64x128xi32>
    %cst_10 = arith.constant dense<2147483647> : vector<64xi32>
    %34 = vector.multi_reduction <minsi>, %33, %cst_10 [1] : vector<64x128xi32> to vector<64xi32>
    %35 = vector.shape_cast %34 : vector<64xi32> to vector<64x1xi32>
    %36 = vector.broadcast %35 : vector<64x1xi32> to vector<64x128xi32>
    %37 = arith.cmpi eq, %11, %36 : vector<64x128xi32>
    %38 = vector.broadcast %cst_5 : f32 to vector<64x128xf32>
    %39 = arith.select %37, %38, %27 : vector<64x128xi1>, vector<64x128xf32>
    %c2_i32 = arith.constant 2 : i32
    %cst_11 = arith.constant dense<0xFF800000> : vector<64xf32>
    %40 = vector.multi_reduction <maximumf>, %39, %cst_11 [1] : vector<64x128xf32> to vector<64xf32>
    %41 = vector.shape_cast %40 : vector<64xf32> to vector<64x1xf32>
    %42 = vector.broadcast %41 : vector<64x1xf32> to vector<64x128xf32>
    %43 = arith.cmpf oeq, %39, %42 : vector<64x128xf32>
    %c128_i32_12 = arith.constant 128 : i32
    %44 = vector.broadcast %c128_i32_12 : i32 to vector<64x128xi32>
    %45 = arith.select %43, %11, %44 : vector<64x128xi1>, vector<64x128xi32>
    %cst_13 = arith.constant dense<2147483647> : vector<64xi32>
    %46 = vector.multi_reduction <minsi>, %45, %cst_13 [1] : vector<64x128xi32> to vector<64xi32>
    %47 = vector.shape_cast %46 : vector<64xi32> to vector<64x1xi32>
    %48 = vector.broadcast %47 : vector<64x1xi32> to vector<64x128xi32>
    %49 = arith.cmpi eq, %11, %48 : vector<64x128xi32>
    %50 = vector.broadcast %cst_5 : f32 to vector<64x128xf32>
    %51 = arith.select %49, %50, %39 : vector<64x128xi1>, vector<64x128xf32>
    %c3_i32 = arith.constant 3 : i32
    %cst_14 = arith.constant dense<0xFF800000> : vector<64xf32>
    %52 = vector.multi_reduction <maximumf>, %51, %cst_14 [1] : vector<64x128xf32> to vector<64xf32>
    %53 = vector.shape_cast %52 : vector<64xf32> to vector<64x1xf32>
    %54 = vector.broadcast %53 : vector<64x1xf32> to vector<64x128xf32>
    %55 = arith.cmpf oeq, %51, %54 : vector<64x128xf32>
    %c128_i32_15 = arith.constant 128 : i32
    %56 = vector.broadcast %c128_i32_15 : i32 to vector<64x128xi32>
    %57 = arith.select %55, %11, %56 : vector<64x128xi1>, vector<64x128xi32>
    %cst_16 = arith.constant dense<2147483647> : vector<64xi32>
    %58 = vector.multi_reduction <minsi>, %57, %cst_16 [1] : vector<64x128xi32> to vector<64xi32>
    %59 = vector.shape_cast %58 : vector<64xi32> to vector<64x1xi32>
    %60 = vector.broadcast %59 : vector<64x1xi32> to vector<64x128xi32>
    %61 = arith.cmpi eq, %11, %60 : vector<64x128xi32>
    %62 = vector.broadcast %cst_5 : f32 to vector<64x128xf32>
    %63 = arith.select %61, %62, %51 : vector<64x128xi1>, vector<64x128xf32>
    %cst_17 = arith.constant 0xFF800000 : f32
    %64 = vector.broadcast %cst_17 : f32 to vector<64x128xf32>
    %65 = arith.cmpf oeq, %63, %64 : vector<64x128xf32>
    %cst_18 = arith.constant 0.000000e+00 : f32
    %66 = vector.broadcast %cst_18 : f32 to vector<64x128xf32>
    %67 = arith.select %65, %10, %66 : vector<64x128xi1>, vector<64x128xf32>
    %c0_19 = arith.constant 0 : index
    %c0_20 = arith.constant 0 : index
    %68 = vector.load %arg2[%c0_19, %c0_20] : memref<64x128xf32, #tpu.memory_space<vmem>>, vector<64x128xf32>
    tpu.vector_store %arg2[%c0_19, %c0_20], %67 {strides = array<i32>} : memref<64x128xf32, #tpu.memory_space<vmem>>, vector<64x128xf32>,
    return
  }
  func.func @transform_0(%arg0: i32) -> (i32, i32) {
    %c0_i32 = arith.constant 0 : i32
    %c0_i32_0 = arith.constant 0 : i32
    %c0_i32_1 = arith.constant 0 : i32
    return %c0_i32, %c0_i32_0 : i32, i32
  }
  func.func @transform_1(%arg0: i32) -> (i32, i32) {
    %c0_i32 = arith.constant 0 : i32
    %c0_i32_0 = arith.constant 0 : i32
    return %arg0, %c0_i32 : i32, i32
  }
}

</mosaic_0001>

<bundles_post_ra>
// kernel: graph_undirected_forward.3
= control target key start
LH: loop header
LB: loop body
LE: loop exit
PB: predicated region body
PF: predicated region fallthrough
CT: control target
= control target key end

     0   :  { %s1141_s6 = smov 0   ;;  %s1537_s0 = inlined_call_operand.vmem [shape: f32[128,128], index: 0, kind: input, shape index: {}]   ;;  %s1538_s1 = inlined_call_operand.vmem [shape: f32[128,128], index: 1, kind: output, shape index: {}]  }
   0x1 LB: > { %s974_s7 = sadd.s32 4294967295, %s1129_s6   ;;  %p977_p0 = scmp.ge.s32.totalorder %s1129_s6, 1  ;;  %s1129_s6 = sphi %s1141_s6, %s11_s6  }
   0x2   : > { %p77_p1 = scmp.lt.s32.totalorder %s1129_s6, 3 }
   0x4   : > { %p78_p2 = pnand %p977_p0, %p77_p1 }
   0x5   : > { %v108_v0 = vld [vmem:[%s1537_s0] sm:$0xff] (!%p78_p2)  ;;  %v109_v1 = vld [vmem:[%s1537_s0 + $0x8] sm:$0xff] (!%p78_p2)  ;;  %v110_v2 = vld [vmem:[%s1537_s0 + $0x10] sm:$0xff] (!%p78_p2)  ;;  %s980_s14 = sshll.u32 (!%p78_p2), %s974_s7, 6  ;;  %v253_v46 = vlaneseq (!%p78_p2)  ;;  %s978_s17 = sshll.u32 (!%p78_p2), %s974_s7, 3 }
   0x6   : > { %81 = sbr.rel (%p78_p2) target bundleno = 2079 (0x81f), region = 24  ;;  %v1051_v3 = vpack.c.bf16 (!%p78_p2), %v109_v1, %v108_v0  ;;  %v111_v4 = vld [vmem:[%s1537_s0 + $0x18] sm:$0xff] (!%p78_p2)  ;;  %s1166_s19 = scalar_lea.vmem (!%p78_p2), %s1537_s0, %s980_s14  ;;  %v112_v8 = vld [vmem:[%s1537_s0 + $0x20] sm:$0xff] (!%p78_p2)  ;;  %v113_v9 = vld [vmem:[%s1537_s0 + $0x28] sm:$0xff] (!%p78_p2) }
   0x7   : > { %v1055_v5 = vpack.c.bf16 (!%p78_p2), %v111_v4, %v110_v2  ;;  %v100_v6 = vld [vmem:[%s1166_s19] sm:$0xff] (!%p78_p2)  ;;  %v1059_v10 = vpack.c.bf16 (!%p78_p2), %v113_v9, %v112_v8  ;;  %v114_v11 = vld [vmem:[%s1537_s0 + $0x30] sm:$0xff] (!%p78_p2)  ;;  %v115_v12 = vld [vmem:[%s1537_s0 + $0x38] sm:$0xff] (!%p78_p2)  ;;  %v1212_v49 = vand.u32 (!%p78_p2), 127, %v253_v46  ;;  %p93_p3 = scmp.lt.s32.totalorder (!%p78_p2), %s978_s17, 15 }
   0x8   : > { %1052 = vmatprep.subr.bf16.mxu0 (!%p78_p2), %v1051_v3  ;;  %1083 = vmatprep.subr.bf16.mxu1 (!%p78_p2), %v1051_v3  ;;  %v104_v7 = vld [vmem:[%s1166_s19 + $0x20] sm:$0xff] (!%p78_p2)  ;;  %v1063_v13 = vpack.c.bf16 (!%p78_p2), %v115_v12, %v114_v11  ;;  %v117_v15 = vld [vmem:[%s1537_s0 + $0x48] sm:$0xff] (!%p78_p2)  ;;  %v118_v17 = vld [vmem:[%s1537_s0 + $0x50] sm:$0xff] (!%p78_p2) }
   0x9   : > { %1054 = vmatpush3.bf16.xpose.msra.mxu0 (!%p78_p2), %v1051_v3  ;;  %1091 = vmatpush3.bf16.xpose.msra.mxu1 (!%p78_p2), %v1051_v3  ;;  %v116_v14 = vld [vmem:[%s1537_s0 + $0x40] sm:$0xff] (!%p78_p2)  ;;  %v119_v18 = vld [vmem:[%s1537_s0 + $0x58] sm:$0xff] (!%p78_p2)  ;;  %v121_v21 = vld [vmem:[%s1537_s0 + $0x68] sm:$0xff] (!%p78_p2)  ;;  %vm255_vm0 = vcmp.lt.s32.totalorder (!%p78_p2), %v1212_v49, 8 }
   0xa   : > { %1056 = vmatprep.subr.bf16.mxu0 (!%p78_p2), %v1055_v5  ;;  %1084 = vmatprep.subr.bf16.mxu1 (!%p78_p2), %v1055_v5  ;;  %v1067_v16 = vpack.c.bf16 (!%p78_p2), %v117_v15, %v116_v14  ;;  %v1071_v19 = vpack.c.bf16 (!%p78_p2), %v119_v18, %v118_v17  ;;  %v120_v20 = vld [vmem:[%s1537_s0 + $0x60] sm:$0xff] (!%p78_p2)  ;;  %v122_v23 = vld [vmem:[%s1537_s0 + $0x70] sm:$0xff] (!%p78_p2)  ;;  %v123_v24 = vld [vmem:[%s1537_s0 + $0x78] sm:$0xff] (!%p78_p2) }
   0xb   : > { %1039 = vmatprep.mubr.f32.mxu0 (!%p78_p2), %v100_v6  ;;  %1045 = vmatprep.mubr.f32.mxu1 (!%p78_p2), %v104_v7  ;;  %v1075_v22 = vpack.c.bf16 (!%p78_p2), %v121_v21, %v120_v20  ;;  %v1079_v25 = vpack.c.bf16 (!%p78_p2), %v123_v24, %v122_v23  ;;  %v101_v26 = vld [vmem:[%s1166_s19 + $0x8] sm:$0xff] (!%p78_p2)  ;;  %v102_v28 = vld [vmem:[%s1166_s19 + $0x10] sm:$0xff] (!%p78_p2)  ;;  %v103_v30 = vld [vmem:[%s1166_s19 + $0x18] sm:$0xff] (!%p78_p2) }
   0xc   : > { %v105_v27 = vld [vmem:[%s1166_s19 + $0x28] sm:$0xff] (!%p78_p2)  ;;  %v106_v29 = vld [vmem:[%s1166_s19 + $0x30] sm:$0xff] (!%p78_p2)  ;;  %v107_v31 = vld [vmem:[%s1166_s19 + $0x38] sm:$0xff] (!%p78_p2) }
   0xd   : > { %s1540_s17 = smov (!%p93_p3, %s978_s17), 15 }
   0xe   : > { %s979_s18 = sshll.u32 %s1540_s17, 3 }
   0xf   : > { %s1491_s20 = scalar_lea.vmem %s1538_s1, %s979_s18 }
  0x11   : > { %1058 = vmatpush3.bf16.xpose.msra.mxu0 %v1055_v5  ;;  %1092 = vmatpush3.bf16.xpose.msra.mxu1 %v1055_v5 }
  0x12   : > { %1060 = vmatprep.subr.bf16.mxu0 %v1059_v10  ;;  %1085 = vmatprep.subr.bf16.mxu1 %v1059_v10 }
  0x19   : > { %1062 = vmatpush3.bf16.xpose.msra.mxu0 %v1059_v10  ;;  %1093 = vmatpush3.bf16.xpose.msra.mxu1 %v1059_v10 }
  0x1a   : > { %1064 = vmatprep.subr.bf16.mxu0 %v1063_v13  ;;  %1086 = vmatprep.subr.bf16.mxu1 %v1063_v13 }
  0x21   : > { %1066 = vmatpush3.bf16.xpose.msra.mxu0 %v1063_v13  ;;  %1094 = vmatpush3.bf16.xpose.msra.mxu1 %v1063_v13 }
  0x22   : > { %1068 = vmatprep.subr.bf16.mxu0 %v1067_v16  ;;  %1087 = vmatprep.subr.bf16.mxu1 %v1067_v16 }
  0x29   : > { %1070 = vmatpush3.bf16.xpose.msra.mxu0 %v1067_v16  ;;  %1095 = vmatpush3.bf16.xpose.msra.mxu1 %v1067_v16 }
  0x2a   : > { %1072 = vmatprep.subr.bf16.mxu0 %v1071_v19  ;;  %1088 = vmatprep.subr.bf16.mxu1 %v1071_v19 }
  0x31   : > { %1074 = vmatpush3.bf16.xpose.msra.mxu0 %v1071_v19  ;;  %1096 = vmatpush3.bf16.xpose.msra.mxu1 %v1071_v19 }
  0x32   : > { %1076 = vmatprep.subr.bf16.mxu0 %v1075_v22  ;;  %1089 = vmatprep.subr.bf16.mxu1 %v1075_v22 }
  0x39   : > { %1078 = vmatpush3.bf16.xpose.msra.mxu0 %v1075_v22  ;;  %1097 = vmatpush3.bf16.xpose.msra.mxu1 %v1075_v22 }
  0x3a   : > { %1080 = vmatprep.subr.bf16.mxu0 %v1079_v25  ;;  %1090 = vmatprep.subr.bf16.mxu1 %v1079_v25 }
  0x41   : > { %1082 = vmatpush3.bf16.xpose.msra.mxu0 %v1079_v25  ;;  %1098 = vmatpush3.bf16.xpose.msra.mxu1 %v1079_v25 }
  0x48   : > { %1040 = vmatmul.mubr.f32.vlgmr.msra.gmra.mrb[0].mxu0 %v101_v26  ;;  %1046 = vmatmul.mubr.f32.vlgmr.msra.gmra.mrb[0].mxu1 %v105_v27 }
  0x49   : > { %1042 = vmatprep.mubr.f32.mxu0 %v102_v28  ;;  %1048 = vmatprep.mubr.f32.mxu1 %v106_v29 }
  0x4c   : > { %1043 = vmatmul.mubr.f32.gmra.mrb[2].mxu0 %v103_v30  ;;  %1049 = vmatmul.mubr.f32.gmra.mrb[2].mxu1 %v107_v31 }
 0x11b   : > { %v1041_v32 = vpop.f32.mrb[0].mxu0  ;;  %v1047_v33 = vpop.f32.mrb[0].mxu1 }
 0x11c   : > { %v230_v34 = vmul.f32 3.0, %v1041_v32  ;;  %v234_v35 = vmul.f32 3.0, %v1047_v33  ;;  %v190_v36 = vpop.f32.mrb[1].mxu0  ;;  %v210_v37 = vpop.f32.mrb[1].mxu1 }
 0x11d   : > { %v229_v38 = vmul.f32 3.0, %v190_v36  ;;  %v233_v39 = vmul.f32 3.0, %v210_v37 }
 0x11e   : > { %1107 = vtanh.f32 %v230_v34 }
 0x11f   : > { %1109 = vtanh.f32 %v234_v35  ;;  %v1044_v40 = vpop.f32.mrb[2].mxu0  ;;  %v1050_v41 = vpop.f32.mrb[2].mxu1 }
 0x120   : > { %1111 = vtanh.f32 %v229_v38  ;;  %v232_v42 = vmul.f32 3.0, %v1044_v40  ;;  %v200_v43 = vpop.f32.mrb[3].mxu0  ;;  %v236_v44 = vmul.f32 3.0, %v1050_v41  ;;  %v220_v45 = vpop.f32.mrb[3].mxu1 }
 0x121   : > { %1113 = vtanh.f32 %v233_v39  ;;  %v231_v47 = vmul.f32 3.0, %v200_v43  ;;  %v235_v48 = vmul.f32 3.0, %v220_v45 }
 0x122   : > { %1115 = vtanh.f32 %v232_v42 }
 0x123   : > { %1117 = vtanh.f32 %v231_v47 }
 0x124   : > { %1119 = vtanh.f32 %v236_v44 }
 0x125   : > { %1121 = vtanh.f32 %v235_v48 }
 0x128   : > { %v1214_v50 = vpop.eup %1107 }
 0x129   : > { %v1217_v51 = vpop.eup %1109  ;;  %v246_v52 = vmax.f32 %v1214_v50, 0.0 }
 0x12a   : > { %v1220_v53 = vpop.eup %1111  ;;  %v250_v54 = vmax.f32 %v1217_v51, 0.0 }
 0x12b   : > { %v1223_v55 = vpop.eup %1113  ;;  %v1229_v56 = vsel %vm255_vm0, %v246_v52, -1.0  ;;  %v245_v57 = vmax.f32 %v1220_v53, 0.0 }
 0x12c   : > { %v1232_v58 = vpop.eup %1115  ;;  %v1238_v59 = vsel %vm255_vm0, %v250_v54, -1.0  ;;  %266 = vmax.xlane.f32.xlu0 %v1229_v56  ;;  %v249_v3 = vmax.f32 %v1223_v55, 0.0 }
 0x12d   : > { %v1241_v60 = vpop.eup %1117  ;;  %274 = vmax.xlane.f32.xlu1 %v1238_v59  ;;  %v248_v61 = vmax.f32 %v1232_v58, 0.0  ;;  %v1254_v1 = vsel %vm255_vm0, %v245_v57, -1.0 }
 0x12e   : > { %v1245_v62 = vpop.eup %1119  ;;  %v247_v63 = vmax.f32 %v1241_v60, 0.0  ;;  %v1277_v7 = vsel %vm255_vm0, %v249_v3, -1.0 }
 0x12f   : > { %v1248_v0 = vpop.eup %1121  ;;  %v1260_v2 = vsel %vm255_vm0, %v248_v61, -1.0  ;;  %v252_v6 = vmax.f32 %v1245_v62, 0.0 }
 0x130   : > { %264 = vmax.xlane.f32.xlu0 %v1254_v1  ;;  %v251_v4 = vmax.f32 %v1248_v0, 0.0  ;;  %v1270_v5 = vsel %vm255_vm0, %v247_v63, -1.0 }
 0x131   : > { %270 = vmax.xlane.f32.xlu1 %v1260_v2  ;;  %v1291_v9 = vsel %vm255_vm0, %v252_v6, -1.0 }
 0x132   : > { %v1285_v8 = vsel %vm255_vm0, %v251_v4, -1.0 }
 0x134   : > { %272 = vmax.xlane.f32.xlu0 %v1277_v7 }
 0x135   : > { %268 = vmax.xlane.f32.xlu1 %v1270_v5 }
 0x138   : > { %276 = vmax.xlane.f32.xlu0 %v1285_v8 }
 0x139   : > { %278 = vmax.xlane.f32.xlu1 %v1291_v9 }
 0x1b9   : > { %v267_v10 = vpop.xlane.xlu0 %266 }
 0x1ba   : > { %v275_v11 = vpop.xlane.xlu1 %274  ;;  %vm281_vm1 = vcmp.eq.f32.partialorder %v1229_v56, %v267_v10 }
 0x1bb   : > { %vm285_vm2 = vcmp.eq.f32.partialorder %v1238_v59, %v275_v11  ;;  %v289_v12 = vsel %vm281_vm1, %v1212_v49, 128 }
 0x1bc   : > { %v293_v13 = vsel %vm285_vm2, %v1212_v49, 128  ;;  %v311_v14 = vshra.s32 %v289_v12, 16  ;;  %v310_v42 = vand.u32 65535, %v289_v12 }
 0x1bd   : > { %v265_v15 = vpop.xlane.xlu0 %264  ;;  %v367_v18 = vshra.s32 %v293_v13, 16  ;;  %v366_v43 = vand.u32 65535, %v293_v13 }
 0x1be   : > { %vm280_vm3 = vcmp.eq.f32.partialorder %v1254_v1, %v265_v15  ;;  %v271_v16 = vpop.xlane.xlu1 %270  ;;  %v313_v17 = vcvt.s32.f32 %v311_v14  ;;  %v312_v46 = vcvt.s32.f32 %v310_v42 }
 0x1bf   : > { %v288_v19 = vsel %vm280_vm3, %v1212_v49, 128  ;;  %vm283_vm4 = vcmp.eq.f32.partialorder %v1260_v2, %v271_v16  ;;  %v369_v25 = vcvt.s32.f32 %v367_v18  ;;  %v368_v16 = vcvt.s32.f32 %v366_v43 }
 0x1c0   : > { %v291_v20 = vsel %vm283_vm4, %v1212_v49, 128  ;;  %314 = vmin.xlane.f32.xlu1 %v313_v17  ;;  %v297_v21 = vshra.s32 %v288_v19, 16  ;;  %v296_v44 = vand.u32 65535, %v288_v19 }
 0x1c1   : > { %v273_v22 = vpop.xlane.xlu0 %272  ;;  %v339_v26 = vshra.s32 %v291_v20, 16  ;;  %v338_v48 = vand.u32 65535, %v291_v20 }
 0x1c2   : > { %vm284_vm5 = vcmp.eq.f32.partialorder %v1277_v7, %v273_v22  ;;  %v269_v23 = vpop.xlane.xlu1 %268  ;;  %v299_v24 = vcvt.s32.f32 %v297_v21  ;;  %v298_v15 = vcvt.s32.f32 %v296_v44 }
 0x1c3   : > { %v292_v27 = vsel %vm284_vm5, %v1212_v49, 128  ;;  %vm282_vm6 = vcmp.eq.f32.partialorder %v1270_v5, %v269_v23  ;;  %v341_v33 = vcvt.s32.f32 %v339_v26  ;;  %v340_v23 = vcvt.s32.f32 %v338_v48 }
 0x1c4   : > { %v290_v28 = vsel %vm282_vm6, %v1212_v49, 128  ;;  %300 = vmin.xlane.f32.xlu0 %v299_v24  ;;  %370 = vmin.xlane.f32.xlu1 %v369_v25  ;;  %v353_v29 = vshra.s32 %v292_v27, 16  ;;  %v352_v10 = vand.u32 65535, %v292_v27 }
 0x1c5   : > { %v277_v30 = vpop.xlane.xlu0 %276  ;;  %v325_v34 = vshra.s32 %v290_v28, 16  ;;  %v324_v12 = vand.u32 65535, %v290_v28 }
 0x1c6   : > { %vm286_vm7 = vcmp.eq.f32.partialorder %v1285_v8, %v277_v30  ;;  %v279_v31 = vpop.xlane.xlu1 %278  ;;  %v355_v32 = vcvt.s32.f32 %v353_v29  ;;  %v354_v22 = vcvt.s32.f32 %v352_v10 }
 0x1c7   : > { %v294_v35 = vsel %vm286_vm7, %v1212_v49, 128  ;;  %vm287_vm8 = vcmp.eq.f32.partialorder %v1291_v9, %v279_v31  ;;  %v327_v38 = vcvt.s32.f32 %v325_v34 }
 0x1c8   : > { %v295_v36 = vsel %vm287_vm8, %v1212_v49, 128  ;;  %356 = vmin.xlane.f32.xlu0 %v355_v32  ;;  %342 = vmin.xlane.f32.xlu1 %v341_v33  ;;  %v381_v39 = vshra.s32 %v294_v35, 16  ;;  %v380_v27 = vand.u32 65535, %v294_v35 }
 0x1c9   : > { %v395_v37 = vshra.s32 %v295_v36, 16 }
 0x1ca   : > { %v383_v41 = vcvt.s32.f32 %v381_v39 }
 0x1cb   : > { %v397_v40 = vcvt.s32.f32 %v395_v37  ;;  %v382_v37 = vcvt.s32.f32 %v380_v27 }
 0x1cc   : > { %328 = vmin.xlane.f32.xlu0 %v327_v38 }
 0x1cd   : > { %398 = vmin.xlane.f32.xlu1 %v397_v40 }
 0x1d0   : > { %384 = vmin.xlane.f32.xlu0 %v383_v41 }
 0x24d   : > { %v315_v45 = vpop.xlane.xlu1 %314 }
 0x24e   : > { %vm316_vm9 = vcmp.eq.f32.partialorder %v313_v17, %v315_v45  ;;  %v394_v17 = vand.u32 65535, %v295_v36 }
 0x24f   : > { %v317_v47 = vsel %vm316_vm9, %v312_v46, inf }
 0x250   : > { %318 = vmin.xlane.f32.xlu1 %v317_v47  ;;  %v396_v30 = vcvt.s32.f32 %v394_v17 }
 0x251   : > { %v301_v11 = vpop.xlane.xlu0 %300  ;;  %v371_v14 = vpop.xlane.xlu1 %370 }
 0x252   : > { %vm302_vm10 = vcmp.eq.f32.partialorder %v299_v24, %v301_v11  ;;  %vm372_vm11 = vcmp.eq.f32.partialorder %v369_v25, %v371_v14  ;;  %v326_v24 = vcvt.s32.f32 %v324_v12  ;;  %v307_v36 = vcvt.f32.s32 %v301_v11 }
 0x253   : > { %v303_v18 = vsel %vm302_vm10, %v298_v15, inf  ;;  %v373_v21 = vsel %vm372_vm11, %v368_v16, inf  ;;  %v377_v35 = vcvt.f32.s32 %v371_v14 }
 0x254   : > { %304 = vmin.xlane.f32.xlu0 %v303_v18  ;;  %374 = vmin.xlane.f32.xlu1 %v373_v21  ;;  %v308_v46 = vshll.u32 %v307_v36, 16 }
 0x255   : > { %v357_v13 = vpop.xlane.xlu0 %356  ;;  %v343_v19 = vpop.xlane.xlu1 %342  ;;  %v378_v10 = vshll.u32 %v377_v35, 16 }
 0x256   : > { %vm358_vm12 = vcmp.eq.f32.partialorder %v355_v32, %v357_v13  ;;  %vm344_vm13 = vcmp.eq.f32.partialorder %v341_v33, %v343_v19  ;;  %v321_v33 = vcvt.f32.s32 %v315_v45  ;;  %v349_v47 = vcvt.f32.s32 %v343_v19 }
 0x257   : > { %v359_v20 = vsel %vm358_vm12, %v354_v22, inf  ;;  %v345_v26 = vsel %vm344_vm13, %v340_v23, inf }
 0x258   : > { %360 = vmin.xlane.f32.xlu0 %v359_v20  ;;  %346 = vmin.xlane.f32.xlu1 %v345_v26  ;;  %v322_v42 = vshll.u32 %v321_v33, 16  ;;  %v350_v18 = vshll.u32 %v349_v47, 16 }
 0x259   : > { %v329_v29 = vpop.xlane.xlu0 %328 }
 0x25a   : > { %v399_v25 = vpop.xlane.xlu1 %398  ;;  %vm330_vm14 = vcmp.eq.f32.partialorder %v327_v38, %v329_v29  ;;  %v363_v38 = vcvt.f32.s32 %v357_v13  ;;  %v335_v21 = vcvt.f32.s32 %v329_v29 }
 0x25b   : > { %v331_v31 = vsel %vm330_vm14, %v326_v24, inf  ;;  %vm400_vm15 = vcmp.eq.f32.partialorder %v397_v40, %v399_v25  ;;  %v405_v23 = vcvt.f32.s32 %v399_v25 }
 0x25c   : > { %332 = vmin.xlane.f32.xlu0 %v331_v31  ;;  %v401_v28 = vsel %vm400_vm15, %v396_v30, inf  ;;  %v364_v14 = vshll.u32 %v363_v38, 16  ;;  %v336_v27 = vshll.u32 %v335_v21, 16 }
 0x25d   : > { %402 = vmin.xlane.f32.xlu1 %v401_v28  ;;  %v385_v34 = vpop.xlane.xlu0 %384 }
 0x25e   : > { %vm386_vm0 = vcmp.eq.f32.partialorder %v383_v41, %v385_v34  ;;  %v391_v24 = vcvt.f32.s32 %v385_v34 }
 0x25f   : > { %v387_v32 = vsel %vm386_vm0, %v382_v37, inf }
 0x260   : > { %388 = vmin.xlane.f32.xlu0 %v387_v32  ;;  %v392_v33 = vshll.u32 %v391_v24, 16 }
 0x2dd   : > { %v319_v39 = vpop.xlane.xlu1 %318 }
 0x2de   : > { %v320_v43 = vcvt.f32.s32 %v319_v39 }
 0x2e0   : > { %v323_v44 = vadd.s32 %v322_v42, %v320_v43 }
 0x2e1   : > { %v305_v48 = vpop.xlane.xlu0 %304  ;;  %v375_v40 = vpop.xlane.xlu1 %374 }
 0x2e2   : > { %v306_v15 = vcvt.f32.s32 %v305_v48  ;;  %v376_v16 = vcvt.f32.s32 %v375_v40  ;;  %vm409_vm1 = vcmp.eq.s32.totalorder %v1212_v49, %v323_v44 }
 0x2e3   : > { %v1313_v41 = vsel %vm409_vm1, -inf, %v1229_v56 }
 0x2e4   : > { %v309_v45 = vadd.s32 %v308_v46, %v306_v15  ;;  %v379_v11 = vadd.s32 %v378_v10, %v376_v16  ;;  %426 = vmax.xlane.f32.xlu1 %v1313_v41 }
 0x2e5   : > { %v361_v12 = vpop.xlane.xlu0 %360  ;;  %v347_v13 = vpop.xlane.xlu1 %346 }
 0x2e6   : > { %v362_v19 = vcvt.f32.s32 %v361_v12  ;;  %v348_v22 = vcvt.f32.s32 %v347_v13  ;;  %vm408_vm2 = vcmp.eq.s32.totalorder %v1212_v49, %v309_v45  ;;  %vm413_vm3 = vcmp.eq.s32.totalorder %v1212_v49, %v379_v11 }
 0x2e7   : > { %v1319_v17 = vsel %vm408_vm2, -inf, %v1254_v1  ;;  %v1322_v56 = vsel %vm413_vm3, -inf, %v1238_v59  ;;  %v406_v1 = vshll.u32 %v405_v23, 16 }
 0x2e8   : > { %v365_v20 = vadd.s32 %v364_v14, %v362_v19  ;;  %v351_v26 = vadd.s32 %v350_v18, %v348_v22  ;;  %424 = vmax.xlane.f32.xlu0 %v1319_v17  ;;  %434 = vmax.xlane.f32.xlu1 %v1322_v56 }
 0x2e9   : > { %v333_v29 = vpop.xlane.xlu0 %332 }
 0x2ea   : > { %v334_v30 = vcvt.f32.s32 %v333_v29  ;;  %v403_v31 = vpop.xlane.xlu1 %402  ;;  %vm412_vm4 = vcmp.eq.s32.totalorder %v1212_v49, %v365_v20  ;;  %vm411_vm5 = vcmp.eq.s32.totalorder %v1212_v49, %v351_v26 }
 0x2eb   : > { %v404_v25 = vcvt.f32.s32 %v403_v31  ;;  %v1329_v59 = vsel %vm412_vm4, -inf, %v1277_v7  ;;  %v1332_v28 = vsel %vm411_vm5, -inf, %v1260_v2 }
 0x2ec   : > { %v337_v37 = vadd.s32 %v336_v27, %v334_v30  ;;  %432 = vmax.xlane.f32.xlu0 %v1329_v59  ;;  %430 = vmax.xlane.f32.xlu1 %v1332_v28 }
 0x2ed   : > { %v407_v34 = vadd.s32 %v406_v1, %v404_v25  ;;  %v389_v32 = vpop.xlane.xlu0 %388 }
 0x2ee   : > { %v390_v36 = vcvt.f32.s32 %v389_v32  ;;  %vm410_vm6 = vcmp.eq.s32.totalorder %v1212_v49, %v337_v37 }
 0x2ef   : > { %v1338_v39 = vsel %vm410_vm6, -inf, %v1270_v5  ;;  %vm415_vm7 = vcmp.eq.s32.totalorder %v1212_v49, %v407_v34 }
 0x2f0   : > { %v393_v7 = vadd.s32 %v392_v33, %v390_v36  ;;  %428 = vmax.xlane.f32.xlu0 %v1338_v39  ;;  %v1343_v2 = vsel %vm415_vm7, -inf, %v1291_v9 }
 0x2f1   : > { %438 = vmax.xlane.f32.xlu1 %v1343_v2 }
 0x2f2   : > { %vm414_vm8 = vcmp.eq.s32.totalorder %v1212_v49, %v393_v7 }
 0x2f3   : > { %v1348_v42 = vsel %vm414_vm8, -inf, %v1285_v8 }
 0x2f4   : > { %436 = vmax.xlane.f32.xlu0 %v1348_v42 }
 0x371   : > { %v427_v35 = vpop.xlane.xlu1 %426 }
 0x372   : > { %vm441_vm9 = vcmp.eq.f32.partialorder %v1313_v41, %v427_v35 }
 0x373   : > { %v449_v5 = vsel %vm441_vm9, %v1212_v49, 128 }
 0x374   : > { %v471_v43 = vshra.s32 %v449_v5, 16  ;;  %v470_v25 = vand.u32 65535, %v449_v5 }
 0x375   : > { %v425_v44 = vpop.xlane.xlu0 %424  ;;  %v435_v46 = vpop.xlane.xlu1 %434 }
 0x376   : > { %vm440_vm10 = vcmp.eq.f32.partialorder %v1319_v17, %v425_v44  ;;  %vm445_vm11 = vcmp.eq.f32.partialorder %v1322_v56, %v435_v46  ;;  %v473_v9 = vcvt.s32.f32 %v471_v43  ;;  %v472_v33 = vcvt.s32.f32 %v470_v25 }
 0x377   : > { %v448_v38 = vsel %vm440_vm10, %v1212_v49, 128  ;;  %v453_v8 = vsel %vm445_vm11, %v1212_v49, 128 }
 0x378   : > { %474 = vmin.xlane.f32.xlu1 %v473_v9  ;;  %v457_v47 = vshra.s32 %v448_v38, 16  ;;  %v527_v48 = vshra.s32 %v453_v8, 16  ;;  %v456_v37 = vand.u32 65535, %v448_v38  ;;  %v526_v34 = vand.u32 65535, %v453_v8 }
 0x379   : > { %v433_v40 = vpop.xlane.xlu0 %432  ;;  %v431_v10 = vpop.xlane.xlu1 %430 }
 0x37a   : > { %vm444_vm12 = vcmp.eq.f32.partialorder %v1329_v59, %v433_v40  ;;  %vm443_vm13 = vcmp.eq.f32.partialorder %v1332_v28, %v431_v10  ;;  %v459_v15 = vcvt.s32.f32 %v457_v47  ;;  %v529_v16 = vcvt.s32.f32 %v527_v48 }
 0x37b   : > { %v452_v45 = vsel %vm444_vm12, %v1212_v49, 128  ;;  %v451_v11 = vsel %vm443_vm13, %v1212_v49, 128  ;;  %v458_v46 = vcvt.s32.f32 %v456_v37  ;;  %v528_v47 = vcvt.s32.f32 %v526_v34 }
 0x37c   : > { %460 = vmin.xlane.f32.xlu0 %v459_v15  ;;  %530 = vmin.xlane.f32.xlu1 %v529_v16  ;;  %v513_v14 = vshra.s32 %v452_v45, 16  ;;  %v499_v18 = vshra.s32 %v451_v11, 16  ;;  %v512_v7 = vand.u32 65535, %v452_v45  ;;  %v498_v35 = vand.u32 65535, %v451_v11 }
 0x37d   : > { %v429_v21 = vpop.xlane.xlu0 %428 }
 0x37e   : > { %vm442_vm14 = vcmp.eq.f32.partialorder %v1338_v39, %v429_v21  ;;  %v439_v12 = vpop.xlane.xlu1 %438  ;;  %v515_v13 = vcvt.s32.f32 %v513_v14  ;;  %v501_v19 = vcvt.s32.f32 %v499_v18  ;;  %v514_v10 = vcvt.s32.f32 %v512_v7 }
 0x37f   : > { %v450_v22 = vsel %vm442_vm14, %v1212_v49, 128  ;;  %vm447_vm15 = vcmp.eq.f32.partialorder %v1343_v2, %v439_v12  ;;  %v500_v14 = vcvt.s32.f32 %v498_v35 }
 0x380   : > { %v455_v23 = vsel %vm447_vm15, %v1212_v49, 128  ;;  %516 = vmin.xlane.f32.xlu0 %v515_v13  ;;  %502 = vmin.xlane.f32.xlu1 %v501_v19  ;;  %v485_v20 = vshra.s32 %v450_v22, 16  ;;  %v484_v5 = vand.u32 65535, %v450_v22 }
 0x381   : > { %v437_v26 = vpop.xlane.xlu0 %436  ;;  %v555_v27 = vshra.s32 %v455_v23, 16 }
 0x382   : > { %vm446_vm0 = vcmp.eq.f32.partialorder %v1348_v42, %v437_v26  ;;  %v487_v29 = vcvt.s32.f32 %v485_v20 }
 0x383   : > { %v454_v24 = vsel %vm446_vm0, %v1212_v49, 128  ;;  %v557_v30 = vcvt.s32.f32 %v555_v27 }
 0x384   : > { %488 = vmin.xlane.f32.xlu0 %v487_v29  ;;  %v541_v31 = vshra.s32 %v454_v24, 16  ;;  %v540_v18 = vand.u32 65535, %v454_v24 }
 0x385   : > { %558 = vmin.xlane.f32.xlu1 %v557_v30 }
 0x386   : > { %v543_v1 = vcvt.s32.f32 %v541_v31  ;;  %v542_v27 = vcvt.s32.f32 %v540_v18 }
 0x388   : > { %544 = vmin.xlane.f32.xlu0 %v543_v1 }
 0x405   : > { %v475_v32 = vpop.xlane.xlu1 %474 }
 0x406   : > { %vm476_vm1 = vcmp.eq.f32.partialorder %v473_v9, %v475_v32  ;;  %v554_v9 = vand.u32 65535, %v455_v23 }
 0x407   : > { %v477_v36 = vsel %vm476_vm1, %v472_v33, inf }
 0x408   : > { %478 = vmin.xlane.f32.xlu1 %v477_v36  ;;  %v556_v12 = vcvt.s32.f32 %v554_v9 }
 0x409   : > { %v461_v43 = vpop.xlane.xlu0 %460  ;;  %v531_v44 = vpop.xlane.xlu1 %530 }
 0x40a   : > { %vm462_vm2 = vcmp.eq.f32.partialorder %v459_v15, %v461_v43  ;;  %vm532_vm3 = vcmp.eq.f32.partialorder %v529_v16, %v531_v44  ;;  %v486_v15 = vcvt.s32.f32 %v484_v5  ;;  %v467_v23 = vcvt.f32.s32 %v461_v43 }
 0x40b   : > { %v463_v48 = vsel %vm462_vm2, %v458_v46, inf  ;;  %v533_v40 = vsel %vm532_vm3, %v528_v47, inf  ;;  %v537_v24 = vcvt.f32.s32 %v531_v44 }
 0x40c   : > { %464 = vmin.xlane.f32.xlu0 %v463_v48  ;;  %534 = vmin.xlane.f32.xlu1 %v533_v40  ;;  %v468_v33 = vshll.u32 %v467_v23, 16 }
 0x40d   : > { %v517_v38 = vpop.xlane.xlu0 %516  ;;  %v503_v8 = vpop.xlane.xlu1 %502  ;;  %v538_v35 = vshll.u32 %v537_v24, 16 }
 0x40e   : > { %vm518_vm4 = vcmp.eq.f32.partialorder %v515_v13, %v517_v38  ;;  %vm504_vm5 = vcmp.eq.f32.partialorder %v501_v19, %v503_v8  ;;  %v481_v19 = vcvt.f32.s32 %v475_v32  ;;  %v509_v36 = vcvt.f32.s32 %v503_v8 }
 0x40f   : > { %v519_v45 = vsel %vm518_vm4, %v514_v10, inf  ;;  %v505_v11 = vsel %vm504_vm5, %v500_v14, inf }
 0x410   : > { %520 = vmin.xlane.f32.xlu0 %v519_v45  ;;  %506 = vmin.xlane.f32.xlu1 %v505_v11  ;;  %v482_v25 = vshll.u32 %v481_v19, 16  ;;  %v510_v48 = vshll.u32 %v509_v36, 16 }
 0x411   : > { %v489_v21 = vpop.xlane.xlu0 %488 }
 0x412   : > { %v559_v16 = vpop.xlane.xlu1 %558  ;;  %vm490_vm6 = vcmp.eq.f32.partialorder %v487_v29, %v489_v21  ;;  %v523_v29 = vcvt.f32.s32 %v517_v38  ;;  %v495_v40 = vcvt.f32.s32 %v489_v21 }
 0x413   : > { %v491_v20 = vsel %vm490_vm6, %v486_v15, inf  ;;  %vm560_vm7 = vcmp.eq.f32.partialorder %v557_v30, %v559_v16  ;;  %v565_v14 = vcvt.f32.s32 %v559_v16 }
 0x414   : > { %492 = vmin.xlane.f32.xlu0 %v491_v20  ;;  %v561_v22 = vsel %vm560_vm7, %v556_v12, inf  ;;  %v524_v44 = vshll.u32 %v523_v29, 16  ;;  %v496_v18 = vshll.u32 %v495_v40, 16 }
 0x415   : > { %562 = vmin.xlane.f32.xlu1 %v561_v22  ;;  %v545_v26 = vpop.xlane.xlu0 %544 }
 0x416   : > { %vm546_vm8 = vcmp.eq.f32.partialorder %v543_v1, %v545_v26  ;;  %v551_v15 = vcvt.f32.s32 %v545_v26 }
 0x417   : > { %v547_v13 = vsel %vm546_vm8, %v542_v27, inf }
 0x418   : > { %548 = vmin.xlane.f32.xlu0 %v547_v13  ;;  %v552_v19 = vshll.u32 %v551_v15, 16 }
 0x495   : > { %v479_v31 = vpop.xlane.xlu1 %478 }
 0x496   : > { %v480_v37 = vcvt.f32.s32 %v479_v31 }
 0x498   : > { %v483_v34 = vadd.s32 %v482_v25, %v480_v37 }
 0x499   : > { %v465_v7 = vpop.xlane.xlu0 %464  ;;  %v535_v30 = vpop.xlane.xlu1 %534 }
 0x49a   : > { %v466_v46 = vcvt.f32.s32 %v465_v7  ;;  %v536_v47 = vcvt.f32.s32 %v535_v30  ;;  %vm569_vm9 = vcmp.eq.s32.totalorder %v1212_v49, %v483_v34 }
 0x49b   : > { %v1369_v1 = vsel %vm569_vm9, -inf, %v1313_v41 }
 0x49c   : > { %v469_v32 = vadd.s32 %v468_v33, %v466_v46  ;;  %v539_v43 = vadd.s32 %v538_v35, %v536_v47  ;;  %586 = vmax.xlane.f32.xlu1 %v1369_v1 }
 0x49d   : > { %v521_v5 = vpop.xlane.xlu0 %520  ;;  %v507_v38 = vpop.xlane.xlu1 %506 }
 0x49e   : > { %v522_v8 = vcvt.f32.s32 %v521_v5  ;;  %v508_v10 = vcvt.f32.s32 %v507_v38  ;;  %vm568_vm10 = vcmp.eq.s32.totalorder %v1212_v49, %v469_v32  ;;  %vm573_vm11 = vcmp.eq.s32.totalorder %v1212_v49, %v539_v43 }
 0x49f   : > { %v1375_v9 = vsel %vm568_vm10, -inf, %v1319_v17  ;;  %v1378_v41 = vsel %vm573_vm11, -inf, %v1322_v56  ;;  %v566_v17 = vshll.u32 %v565_v14, 16 }
 0x4a0   : > { %v525_v45 = vadd.s32 %v524_v44, %v522_v8  ;;  %v511_v11 = vadd.s32 %v510_v48, %v508_v10  ;;  %584 = vmax.xlane.f32.xlu0 %v1375_v9  ;;  %594 = vmax.xlane.f32.xlu1 %v1378_v41 }
 0x4a1   : > { %v493_v21 = vpop.xlane.xlu0 %492 }
 0x4a2   : > { %v494_v12 = vcvt.f32.s32 %v493_v21  ;;  %v563_v20 = vpop.xlane.xlu1 %562  ;;  %vm572_vm12 = vcmp.eq.s32.totalorder %v1212_v49, %v525_v45  ;;  %vm571_vm13 = vcmp.eq.s32.totalorder %v1212_v49, %v511_v11 }
 0x4a3   : > { %v564_v16 = vcvt.f32.s32 %v563_v20  ;;  %v1385_v56 = vsel %vm572_vm12, -inf, %v1329_v59  ;;  %v1388_v22 = vsel %vm571_vm13, -inf, %v1332_v28 }
 0x4a4   : > { %v497_v27 = vadd.s32 %v496_v18, %v494_v12  ;;  %592 = vmax.xlane.f32.xlu0 %v1385_v56  ;;  %590 = vmax.xlane.f32.xlu1 %v1388_v22 }
 0x4a5   : > { %v567_v26 = vadd.s32 %v566_v17, %v564_v16  ;;  %v549_v13 = vpop.xlane.xlu0 %548 }
 0x4a6   : > { %v550_v23 = vcvt.f32.s32 %v549_v13  ;;  %vm570_vm14 = vcmp.eq.s32.totalorder %v1212_v49, %v497_v27 }
 0x4a7   : > { %v1394_v31 = vsel %vm570_vm14, -inf, %v1338_v39  ;;  %vm575_vm15 = vcmp.eq.s32.totalorder %v1212_v49, %v567_v26 }
 0x4a8   : > { %v553_v59 = vadd.s32 %v552_v19, %v550_v23  ;;  %588 = vmax.xlane.f32.xlu0 %v1394_v31  ;;  %v1399_v28 = vsel %vm575_vm15, -inf, %v1343_v2 }
 0x4a9   : > { %598 = vmax.xlane.f32.xlu1 %v1399_v28 }
 0x4aa   : > { %vm574_vm0 = vcmp.eq.s32.totalorder %v1212_v49, %v553_v59 }
 0x4ab   : > { %v1404_v25 = vsel %vm574_vm0, -inf, %v1348_v42 }
 0x4ac   : > { %596 = vmax.xlane.f32.xlu0 %v1404_v25 }
 0x529   : > { %v587_v24 = vpop.xlane.xlu1 %586 }
 0x52a   : > { %vm601_vm1 = vcmp.eq.f32.partialorder %v1369_v1, %v587_v24 }
 0x52b   : > { %v609_v39 = vsel %vm601_vm1, %v1212_v49, 128 }
 0x52c   : > { %v631_v37 = vshra.s32 %v609_v39, 16  ;;  %v630_v16 = vand.u32 65535, %v609_v39 }
 0x52d   : > { %v585_v34 = vpop.xlane.xlu0 %584  ;;  %v595_v33 = vpop.xlane.xlu1 %594 }
 0x52e   : > { %vm600_vm2 = vcmp.eq.f32.partialorder %v1375_v9, %v585_v34  ;;  %vm605_vm3 = vcmp.eq.f32.partialorder %v1378_v41, %v595_v33  ;;  %v633_v2 = vcvt.s32.f32 %v631_v37  ;;  %v632_v19 = vcvt.s32.f32 %v630_v16 }
 0x52f   : > { %v608_v29 = vsel %vm600_vm2, %v1212_v49, 128  ;;  %v613_v42 = vsel %vm605_vm3, %v1212_v49, 128 }
 0x530   : > { %634 = vmin.xlane.f32.xlu1 %v633_v2  ;;  %v617_v36 = vshra.s32 %v608_v29, 16  ;;  %v687_v7 = vshra.s32 %v613_v42, 16  ;;  %v616_v27 = vand.u32 65535, %v608_v29  ;;  %v686_v26 = vand.u32 65535, %v613_v42 }
 0x531   : > { %v593_v30 = vpop.xlane.xlu0 %592  ;;  %v591_v35 = vpop.xlane.xlu1 %590 }
 0x532   : > { %vm604_vm4 = vcmp.eq.f32.partialorder %v1385_v56, %v593_v30  ;;  %vm603_vm5 = vcmp.eq.f32.partialorder %v1388_v22, %v591_v35  ;;  %v619_v46 = vcvt.s32.f32 %v617_v36  ;;  %v689_v47 = vcvt.s32.f32 %v687_v7 }
 0x533   : > { %v612_v32 = vsel %vm604_vm4, %v1212_v49, 128  ;;  %v611_v43 = vsel %vm603_vm5, %v1212_v49, 128  ;;  %v618_v33 = vcvt.s32.f32 %v616_v27  ;;  %v688_v36 = vcvt.s32.f32 %v686_v26 }
 0x534   : > { %620 = vmin.xlane.f32.xlu0 %v619_v46  ;;  %690 = vmin.xlane.f32.xlu1 %v689_v47  ;;  %v673_v44 = vshra.s32 %v612_v32, 16  ;;  %v659_v48 = vshra.s32 %v611_v43, 16  ;;  %v672_v59 = vand.u32 65535, %v612_v32  ;;  %v658_v24 = vand.u32 65535, %v611_v43 }
 0x535   : > { %v589_v40 = vpop.xlane.xlu0 %588 }
 0x536   : > { %vm602_vm6 = vcmp.eq.f32.partialorder %v1394_v31, %v589_v40  ;;  %v599_v5 = vpop.xlane.xlu1 %598  ;;  %v675_v38 = vcvt.s32.f32 %v673_v44  ;;  %v661_v8 = vcvt.s32.f32 %v659_v48  ;;  %v674_v35 = vcvt.s32.f32 %v672_v59 }
 0x537   : > { %v610_v10 = vsel %vm602_vm6, %v1212_v49, 128  ;;  %vm607_vm7 = vcmp.eq.f32.partialorder %v1399_v28, %v599_v5  ;;  %v660_v44 = vcvt.s32.f32 %v658_v24 }
 0x538   : > { %v615_v14 = vsel %vm607_vm7, %v1212_v49, 128  ;;  %676 = vmin.xlane.f32.xlu0 %v675_v38  ;;  %662 = vmin.xlane.f32.xlu1 %v661_v8  ;;  %v645_v45 = vshra.s32 %v610_v10, 16  ;;  %v644_v39 = vand.u32 65535, %v610_v10 }
 0x539   : > { %v597_v11 = vpop.xlane.xlu0 %596  ;;  %v715_v18 = vshra.s32 %v615_v14, 16 }
 0x53a   : > { %vm606_vm8 = vcmp.eq.f32.partialorder %v1404_v25, %v597_v11  ;;  %v647_v21 = vcvt.s32.f32 %v645_v45 }
 0x53b   : > { %v614_v15 = vsel %vm606_vm8, %v1212_v49, 128  ;;  %v717_v12 = vcvt.s32.f32 %v715_v18 }
 0x53c   : > { %648 = vmin.xlane.f32.xlu0 %v647_v21  ;;  %v701_v20 = vshra.s32 %v614_v15, 16  ;;  %v700_v48 = vand.u32 65535, %v614_v15 }
 0x53d   : > { %718 = vmin.xlane.f32.xlu1 %v717_v12 }
 0x53e   : > { %v703_v17 = vcvt.s32.f32 %v701_v20  ;;  %v702_v18 = vcvt.s32.f32 %v700_v48 }
 0x540   : > { %704 = vmin.xlane.f32.xlu0 %v703_v17 }
 0x5bd   : > { %v635_v13 = vpop.xlane.xlu1 %634 }
 0x5be   : > { %vm636_vm9 = vcmp.eq.f32.partialorder %v633_v2, %v635_v13  ;;  %v714_v2 = vand.u32 65535, %v615_v14 }
 0x5bf   : > { %v637_v23 = vsel %vm636_vm9, %v632_v19, inf }
 0x5c0   : > { %638 = vmin.xlane.f32.xlu1 %v637_v23  ;;  %v716_v5 = vcvt.s32.f32 %v714_v2 }
 0x5c1   : > { %v621_v37 = vpop.xlane.xlu0 %620  ;;  %v691_v34 = vpop.xlane.xlu1 %690 }
 0x5c2   : > { %vm622_vm10 = vcmp.eq.f32.partialorder %v619_v46, %v621_v37  ;;  %vm692_vm11 = vcmp.eq.f32.partialorder %v689_v47, %v691_v34  ;;  %v646_v46 = vcvt.s32.f32 %v644_v39  ;;  %v627_v14 = vcvt.f32.s32 %v621_v37 }
 0x5c3   : > { %v623_v7 = vsel %vm622_vm10, %v618_v33, inf  ;;  %v693_v30 = vsel %vm692_vm11, %v688_v36, inf  ;;  %v697_v15 = vcvt.f32.s32 %v691_v34 }
 0x5c4   : > { %624 = vmin.xlane.f32.xlu0 %v623_v7  ;;  %694 = vmin.xlane.f32.xlu1 %v693_v30  ;;  %v628_v19 = vshll.u32 %v627_v14, 16 }
 0x5c5   : > { %v677_v29 = vpop.xlane.xlu0 %676  ;;  %v663_v42 = vpop.xlane.xlu1 %662  ;;  %v698_v24 = vshll.u32 %v697_v15, 16 }
 0x5c6   : > { %vm678_vm12 = vcmp.eq.f32.partialorder %v675_v38, %v677_v29  ;;  %vm664_vm13 = vcmp.eq.f32.partialorder %v661_v8, %v663_v42  ;;  %v641_v8 = vcvt.f32.s32 %v635_v13  ;;  %v669_v23 = vcvt.f32.s32 %v663_v42 }
 0x5c7   : > { %v679_v32 = vsel %vm678_vm12, %v674_v35, inf  ;;  %v665_v43 = vsel %vm664_vm13, %v660_v44, inf }
 0x5c8   : > { %680 = vmin.xlane.f32.xlu0 %v679_v32  ;;  %666 = vmin.xlane.f32.xlu1 %v665_v43  ;;  %v642_v16 = vshll.u32 %v641_v8, 16  ;;  %v670_v7 = vshll.u32 %v669_v23, 16 }
 0x5c9   : > { %v649_v40 = vpop.xlane.xlu0 %648 }
 0x5ca   : > { %v719_v47 = vpop.xlane.xlu1 %718  ;;  %vm650_vm14 = vcmp.eq.f32.partialorder %v647_v21, %v649_v40  ;;  %v683_v21 = vcvt.f32.s32 %v677_v29  ;;  %v655_v30 = vcvt.f32.s32 %v649_v40 }
 0x5cb   : > { %v651_v45 = vsel %vm650_vm14, %v646_v46, inf  ;;  %vm720_vm15 = vcmp.eq.f32.partialorder %v717_v12, %v719_v47  ;;  %v725_v44 = vcvt.f32.s32 %v719_v47 }
 0x5cc   : > { %652 = vmin.xlane.f32.xlu0 %v651_v45  ;;  %v721_v10 = vsel %vm720_vm15, %v716_v5, inf  ;;  %v684_v34 = vshll.u32 %v683_v21, 16  ;;  %v656_v48 = vshll.u32 %v655_v30, 16 }
 0x5cd   : > { %722 = vmin.xlane.f32.xlu1 %v721_v10  ;;  %v705_v11 = vpop.xlane.xlu0 %704 }
 0x5ce   : > { %vm706_vm0 = vcmp.eq.f32.partialorder %v703_v17, %v705_v11  ;;  %v711_v46 = vcvt.f32.s32 %v705_v11 }
 0x5cf   : > { %v707_v38 = vsel %vm706_vm0, %v702_v18, inf }
 0x5d0   : > { %708 = vmin.xlane.f32.xlu0 %v707_v38  ;;  %v712_v8 = vshll.u32 %v711_v46, 16 }
 0x64d   : > { %v639_v20 = vpop.xlane.xlu1 %638 }
 0x64e   : > { %v640_v27 = vcvt.f32.s32 %v639_v20 }
 0x650   : > { %v643_v26 = vadd.s32 %v642_v16, %v640_v27 }
 0x651   : > { %v625_v59 = vpop.xlane.xlu0 %624  ;;  %v695_v12 = vpop.xlane.xlu1 %694 }
 0x652   : > { %v626_v33 = vcvt.f32.s32 %v625_v59  ;;  %v696_v36 = vcvt.f32.s32 %v695_v12  ;;  %vm729_vm1 = vcmp.eq.s32.totalorder %v1212_v49, %v643_v26 }
 0x653   : > { %v1425_v17 = vsel %vm729_vm1, -inf, %v1369_v1 }
 0x654   : > { %v629_v13 = vadd.s32 %v628_v19, %v626_v33  ;;  %v699_v37 = vadd.s32 %v698_v24, %v696_v36  ;;  %746 = vmax.xlane.f32.xlu1 %v1425_v17 }
 0x655   : > { %v681_v39 = vpop.xlane.xlu0 %680  ;;  %v667_v29 = vpop.xlane.xlu1 %666 }
 0x656   : > { %v682_v42 = vcvt.f32.s32 %v681_v39  ;;  %v668_v35 = vcvt.f32.s32 %v667_v29  ;;  %vm728_vm2 = vcmp.eq.s32.totalorder %v1212_v49, %v629_v13  ;;  %vm733_vm3 = vcmp.eq.s32.totalorder %v1212_v49, %v699_v37 }
 0x657   : > { %v1431_v2 = vsel %vm728_vm2, -inf, %v1375_v9  ;;  %v1434_v1 = vsel %vm733_vm3, -inf, %v1378_v41  ;;  %v726_v9 = vshll.u32 %v725_v44, 16 }
 0x658   : > { %v685_v32 = vadd.s32 %v684_v34, %v682_v42  ;;  %v671_v43 = vadd.s32 %v670_v7, %v668_v35  ;;  %744 = vmax.xlane.f32.xlu0 %v1431_v2  ;;  %754 = vmax.xlane.f32.xlu1 %v1434_v1 }
 0x659   : > { %v653_v40 = vpop.xlane.xlu0 %652 }
 0x65a   : > { %v654_v5 = vcvt.f32.s32 %v653_v40  ;;  %v723_v45 = vpop.xlane.xlu1 %722  ;;  %vm732_vm4 = vcmp.eq.s32.totalorder %v1212_v49, %v685_v32  ;;  %vm731_vm5 = vcmp.eq.s32.totalorder %v1212_v49, %v671_v43 }
 0x65b   : > { %v724_v47 = vcvt.f32.s32 %v723_v45  ;;  %v1441_v41 = vsel %vm732_vm4, -inf, %v1385_v56  ;;  %v1444_v10 = vsel %vm731_vm5, -inf, %v1388_v22 }
 0x65c   : > { %v657_v18 = vadd.s32 %v656_v48, %v654_v5  ;;  %752 = vmax.xlane.f32.xlu0 %v1441_v41  ;;  %750 = vmax.xlane.f32.xlu1 %v1444_v10 }
 0x65d   : > { %v727_v11 = vadd.s32 %v726_v9, %v724_v47  ;;  %v709_v38 = vpop.xlane.xlu0 %708 }
 0x65e   : > { %v710_v14 = vcvt.f32.s32 %v709_v38  ;;  %vm730_vm6 = vcmp.eq.s32.totalorder %v1212_v49, %v657_v18 }
 0x65f   : > { %v1450_v20 = vsel %vm730_vm6, -inf, %v1394_v31  ;;  %vm735_vm7 = vcmp.eq.s32.totalorder %v1212_v49, %v727_v11 }
 0x660   : > { %v713_v56 = vadd.s32 %v712_v8, %v710_v14  ;;  %748 = vmax.xlane.f32.xlu0 %v1450_v20  ;;  %v1455_v22 = vsel %vm735_vm7, -inf, %v1399_v28 }
 0x661   : > { %758 = vmax.xlane.f32.xlu1 %v1455_v22 }
 0x662   : > { %vm734_vm8 = vcmp.eq.s32.totalorder %v1212_v49, %v713_v56 }
 0x663   : > { %v1460_v16 = vsel %vm734_vm8, -inf, %v1404_v25 }
 0x664   : > { %756 = vmax.xlane.f32.xlu0 %v1460_v16 }
 0x6e1   : > { %v747_v15 = vpop.xlane.xlu1 %746 }
 0x6e2   : > { %vm761_vm9 = vcmp.eq.f32.partialorder %v1425_v17, %v747_v15 }
 0x6e3   : > { %v769_v31 = vsel %vm761_vm9, %v1212_v49, 128 }
 0x6e4   : > { %v791_v27 = vshra.s32 %v769_v31, 16  ;;  %v790_v47 = vand.u32 65535, %v769_v31 }
 0x6e5   : > { %v745_v26 = vpop.xlane.xlu0 %744  ;;  %v755_v19 = vpop.xlane.xlu1 %754 }
 0x6e6   : > { %vm760_vm10 = vcmp.eq.f32.partialorder %v1431_v2, %v745_v26  ;;  %vm765_vm11 = vcmp.eq.f32.partialorder %v1434_v1, %v755_v19  ;;  %v793_v28 = vcvt.s32.f32 %v791_v27  ;;  %v792_v8 = vcvt.s32.f32 %v790_v47 }
 0x6e7   : > { %v768_v21 = vsel %vm760_vm10, %v1212_v49, 128  ;;  %v773_v25 = vsel %vm765_vm11, %v1212_v49, 128 }
 0x6e8   : > { %794 = vmin.xlane.f32.xlu1 %v793_v28  ;;  %v777_v23 = vshra.s32 %v768_v21, 16  ;;  %v847_v59 = vshra.s32 %v773_v25, 16  ;;  %v776_v18 = vand.u32 65535, %v768_v21  ;;  %v846_v11 = vand.u32 65535, %v773_v25 }
 0x6e9   : > { %v753_v12 = vpop.xlane.xlu0 %752  ;;  %v751_v24 = vpop.xlane.xlu1 %750 }
 0x6ea   : > { %vm764_vm12 = vcmp.eq.f32.partialorder %v1441_v41, %v753_v12  ;;  %vm763_vm13 = vcmp.eq.f32.partialorder %v1444_v10, %v751_v24  ;;  %v779_v33 = vcvt.s32.f32 %v777_v23  ;;  %v849_v36 = vcvt.s32.f32 %v847_v59 }
 0x6eb   : > { %v772_v13 = vsel %vm764_vm12, %v1212_v49, 128  ;;  %v771_v37 = vsel %vm763_vm13, %v1212_v49, 128  ;;  %v778_v19 = vcvt.s32.f32 %v776_v18  ;;  %v848_v23 = vcvt.s32.f32 %v846_v11 }
 0x6ec   : > { %780 = vmin.xlane.f32.xlu0 %v779_v33  ;;  %850 = vmin.xlane.f32.xlu1 %v849_v36  ;;  %v833_v34 = vshra.s32 %v772_v13, 16  ;;  %v819_v7 = vshra.s32 %v771_v37, 16  ;;  %v832_v56 = vand.u32 65535, %v772_v13  ;;  %v818_v15 = vand.u32 65535, %v771_v37 }
 0x6ed   : > { %v749_v30 = vpop.xlane.xlu0 %748 }
 0x6ee   : > { %vm762_vm14 = vcmp.eq.f32.partialorder %v1450_v20, %v749_v30  ;;  %v759_v39 = vpop.xlane.xlu1 %758  ;;  %v835_v29 = vcvt.s32.f32 %v833_v34  ;;  %v821_v42 = vcvt.s32.f32 %v819_v7  ;;  %v834_v24 = vcvt.s32.f32 %v832_v56 }
 0x6ef   : > { %v770_v35 = vsel %vm762_vm14, %v1212_v49, 128  ;;  %vm767_vm15 = vcmp.eq.f32.partialorder %v1455_v22, %v759_v39  ;;  %v820_v34 = vcvt.s32.f32 %v818_v15 }
 0x6f0   : > { %v775_v44 = vsel %vm767_vm15, %v1212_v49, 128  ;;  %836 = vmin.xlane.f32.xlu0 %v835_v29  ;;  %822 = vmin.xlane.f32.xlu1 %v821_v42  ;;  %v805_v32 = vshra.s32 %v770_v35, 16  ;;  %v804_v31 = vand.u32 65535, %v770_v35 }
 0x6f1   : > { %v757_v43 = vpop.xlane.xlu0 %756  ;;  %v875_v48 = vshra.s32 %v775_v44, 16 }
 0x6f2   : > { %vm766_vm0 = vcmp.eq.f32.partialorder %v1460_v16, %v757_v43  ;;  %v807_v40 = vcvt.s32.f32 %v805_v32 }
 0x6f3   : > { %v774_v46 = vsel %vm766_vm0, %v1212_v49, 128  ;;  %v877_v5 = vcvt.s32.f32 %v875_v48 }
 0x6f4   : > { %808 = vmin.xlane.f32.xlu0 %v807_v40  ;;  %v861_v45 = vshra.s32 %v774_v46, 16  ;;  %v860_v7 = vand.u32 65535, %v774_v46 }
 0x6f5   : > { %878 = vmin.xlane.f32.xlu1 %v877_v5 }
 0x6f6   : > { %v863_v9 = vcvt.s32.f32 %v861_v45 }
 0x6f8   : > { %864 = vmin.xlane.f32.xlu0 %v863_v9 }
 0x775   : > { %v795_v38 = vpop.xlane.xlu1 %794 }
 0x776   : > { %vm796_vm1 = vcmp.eq.f32.partialorder %v793_v28, %v795_v38  ;;  %v874_v28 = vand.u32 65535, %v775_v44  ;;  %v801_v43 = vcvt.f32.s32 %v795_v38 }
 0x777   : > { %v797_v14 = vsel %vm796_vm1, %v792_v8, inf }
 0x778   : > { %798 = vmin.xlane.f32.xlu1 %v797_v14  ;;  %v876_v39 = vcvt.s32.f32 %v874_v28  ;;  %v802_v46 = vshll.u32 %v801_v43, 16 }
 0x779   : > { %v781_v27 = vpop.xlane.xlu0 %780  ;;  %v851_v26 = vpop.xlane.xlu1 %850 }
 0x77a   : > { %vm782_vm2 = vcmp.eq.f32.partialorder %v779_v33, %v781_v27  ;;  %vm852_vm3 = vcmp.eq.f32.partialorder %v849_v36, %v851_v26  ;;  %v806_v36 = vcvt.s32.f32 %v804_v31  ;;  %v787_v48 = vcvt.f32.s32 %v781_v27 }
 0x77b   : > { %v783_v59 = vsel %vm782_vm2, %v778_v19, inf  ;;  %v853_v12 = vsel %vm852_vm3, %v848_v23, inf  ;;  %v857_v45 = vcvt.f32.s32 %v851_v26 }
 0x77c   : > { %784 = vmin.xlane.f32.xlu0 %v783_v59  ;;  %854 = vmin.xlane.f32.xlu1 %v853_v12  ;;  %v788_v18 = vshll.u32 %v787_v48, 16 }
 0x77d   : > { %v837_v21 = vpop.xlane.xlu0 %836  ;;  %v823_v25 = vpop.xlane.xlu1 %822 }
 0x77e   : > { %vm838_vm4 = vcmp.eq.f32.partialorder %v835_v29, %v837_v21  ;;  %vm824_vm5 = vcmp.eq.f32.partialorder %v821_v42, %v823_v25  ;;  %v862_v42 = vcvt.s32.f32 %v860_v7  ;;  %v843_v11 = vcvt.f32.s32 %v837_v21 }
 0x77f   : > { %v839_v13 = vsel %vm838_vm4, %v834_v24, inf  ;;  %v825_v37 = vsel %vm824_vm5, %v820_v34, inf  ;;  %v829_v8 = vcvt.f32.s32 %v823_v25 }
 0x780   : > { %840 = vmin.xlane.f32.xlu0 %v839_v13  ;;  %826 = vmin.xlane.f32.xlu1 %v825_v37  ;;  %v844_v23 = vshll.u32 %v843_v11, 16 }
 0x781   : > { %v809_v33 = vpop.xlane.xlu0 %808  ;;  %v830_v59 = vshll.u32 %v829_v8, 16 }
 0x782   : > { %v1479_v30 = vpop.xlane.xlu1 %878  ;;  %vm810_vm6 = vcmp.eq.f32.partialorder %v807_v40, %v809_v33  ;;  %v815_v12 = vcvt.f32.s32 %v809_v33 }
 0x783   : > { %v811_v35 = vsel %vm810_vm6, %v806_v36, inf  ;;  %vm880_vm7 = vcmp.eq.f32.partialorder %v877_v5, %v1479_v30  ;;  %v885_v34 = vcvt.f32.s32 %v1479_v30 }
 0x784   : > { %812 = vmin.xlane.f32.xlu0 %v811_v35  ;;  %v881_v32 = vsel %vm880_vm7, %v876_v39, inf  ;;  %v816_v37 = vshll.u32 %v815_v12, 16 }
 0x785   : > { %882 = vmin.xlane.f32.xlu1 %v881_v32  ;;  %v1482_v29 = vpop.xlane.xlu0 %864  ;;  %v886_v30 = vshll.u32 %v885_v34, 16 }
 0x786   : > { %vm866_vm8 = vcmp.eq.f32.partialorder %v863_v9, %v1482_v29  ;;  %v858_v9 = vshll.u32 %v857_v45, 16  ;;  %v871_v39 = vcvt.f32.s32 %v1482_v29 }
 0x787   : > { %v867_v44 = vsel %vm866_vm8, %v862_v42, inf }
 0x788   : > { %868 = vmin.xlane.f32.xlu0 %v867_v44  ;;  %v872_v44 = vshll.u32 %v871_v39, 16 }
 0x805   : > { %v799_v40 = vpop.xlane.xlu1 %798 }
 0x806   : > { %v800_v5 = vcvt.f32.s32 %v799_v40 }
 0x808   : > { %v803_v47 = vadd.s32 %v802_v46, %v800_v5 }
 0x809   : > { %v785_v14 = vpop.xlane.xlu0 %784  ;;  %v855_v56 = vpop.xlane.xlu1 %854 }
 0x80a   : > { %vm889_vm9 = vcmp.eq.s32.totalorder %v1212_v49, %v803_v47  ;;  %v786_v15 = vcvt.f32.s32 %v785_v14  ;;  %v856_v19 = vcvt.f32.s32 %v855_v56 }
 0x80b   : > { %v897_v38 = vsel %vm889_vm9, -inf, %v1425_v17 }
 0x80c   : > { %vm905_vm10 = vcmp.eq.f32.partialorder %v897_v38, -inf  ;;  %v789_v27 = vadd.s32 %v788_v18, %v786_v15  ;;  %v859_v26 = vadd.s32 %v858_v9, %v856_v19 }
 0x80d   : > { %v913_v31 = vsel %vm905_vm10, %v246_v52, 0.0  ;;  %v841_v21 = vpop.xlane.xlu0 %840  ;;  %v827_v25 = vpop.xlane.xlu1 %826 }
 0x80e   : > { %921 = vst [vmem:[%s1491_s20 + $0x8] sm:$0xff] %v913_v31  ;;  %vm888_vm11 = vcmp.eq.s32.totalorder %v1212_v49, %v789_v27  ;;  %vm893_vm12 = vcmp.eq.s32.totalorder %v1212_v49, %v859_v26  ;;  %v842_v24 = vcvt.f32.s32 %v841_v21  ;;  %v828_v17 = vcvt.f32.s32 %v827_v25 }
 0x80f   : > { %v896_v28 = vsel %vm888_vm11, -inf, %v1431_v2  ;;  %v901_v13 = vsel %vm893_vm12, -inf, %v1434_v1 }
 0x810   : > { %vm904_vm13 = vcmp.eq.f32.partialorder %v896_v28, -inf  ;;  %vm909_vm14 = vcmp.eq.f32.partialorder %v901_v13, -inf  ;;  %v845_v50 = vadd.s32 %v844_v23, %v842_v24  ;;  %v831_v52 = vadd.s32 %v830_v59, %v828_v17 }
 0x811   : > { %v912_v7 = vsel %vm904_vm13, %v245_v57, 0.0  ;;  %v917_v33 = vsel %vm909_vm14, %v250_v54, 0.0  ;;  %v813_v36 = vpop.xlane.xlu0 %812 }
 0x812   : > { %920 = vst [vmem:[%s1491_s20] sm:$0xff] %v912_v7  ;;  %925 = vst [vmem:[%s1491_s20 + $0x28] sm:$0xff] %v917_v33  ;;  %vm892_vm15 = vcmp.eq.s32.totalorder %v1212_v49, %v845_v50  ;;  %vm891_vm0 = vcmp.eq.s32.totalorder %v1212_v49, %v831_v52  ;;  %v814_v2 = vcvt.f32.s32 %v813_v36  ;;  %v883_v1 = vpop.xlane.xlu1 %882 }
 0x813   : > { %v900_v53 = vsel %vm892_vm15, -inf, %v1441_v41  ;;  %v899_v57 = vsel %vm891_vm0, -inf, %v1444_v10  ;;  %v884_v51 = vcvt.f32.s32 %v883_v1 }
 0x814   : > { %vm908_vm1 = vcmp.eq.f32.partialorder %v900_v53, -inf  ;;  %vm907_vm2 = vcmp.eq.f32.partialorder %v899_v57, -inf  ;;  %v817_v54 = vadd.s32 %v816_v37, %v814_v2 }
 0x815   : > { %v916_v35 = vsel %vm908_vm1, %v249_v3, 0.0  ;;  %v915_v32 = vsel %vm907_vm2, %v248_v61, 0.0  ;;  %v887_v29 = vadd.s32 %v886_v30, %v884_v51  ;;  %v869_v42 = vpop.xlane.xlu0 %868 }
 0x816   : > { %924 = vst [vmem:[%s1491_s20 + $0x20] sm:$0xff] %v916_v35  ;;  %923 = vst [vmem:[%s1491_s20 + $0x18] sm:$0xff] %v915_v32  ;;  %vm890_vm3 = vcmp.eq.s32.totalorder %v1212_v49, %v817_v54  ;;  %v870_v41 = vcvt.f32.s32 %v869_v42 }
 0x817   : > { %v898_v10 = vsel %vm890_vm3, -inf, %v1450_v20  ;;  %vm895_vm4 = vcmp.eq.s32.totalorder %v1212_v49, %v887_v29 }
 0x818   : > { %vm906_vm5 = vcmp.eq.f32.partialorder %v898_v10, -inf  ;;  %v903_v55 = vsel %vm895_vm4, -inf, %v1455_v22  ;;  %v873_v58 = vadd.s32 %v872_v44, %v870_v41 }
 0x819   : > { %v914_v61 = vsel %vm906_vm5, %v247_v63, 0.0  ;;  %vm911_vm6 = vcmp.eq.f32.partialorder %v903_v55, -inf }
 0x81a   : > { %922 = vst [vmem:[%s1491_s20 + $0x10] sm:$0xff] %v914_v61  ;;  %v919_v3 = vsel %vm911_vm6, %v252_v6, 0.0  ;;  %vm894_vm7 = vcmp.eq.s32.totalorder %v1212_v49, %v873_v58 }
 0x81b   : > { %927 = vst [vmem:[%s1491_s20 + $0x38] sm:$0xff] %v919_v3  ;;  %v902_v43 = vsel %vm894_vm7, -inf, %v1460_v16 }
 0x81c   : > { %vm910_vm8 = vcmp.eq.f32.partialorder %v902_v43, -inf }
 0x81d   : > { %v918_v20 = vsel %vm910_vm8, %v251_v4, 0.0 }
 0x81e   : > { %926 = vst [vmem:[%s1491_s20 + $0x30] sm:$0xff] %v918_v20 }
 0x81f PF: > { %s11_s6 = sadd.s32 1, %s1129_s6  }
 0x820   : > { %p8_p4 = scmp.ge.s32.totalorder %s11_s6, 4  }
 0x822   :  { %10 = sbr.rel (!%p8_p4) target bundleno = 1 (0x1), region = 52 }

// kernel: graph_undirected_forward.2
= control target key start
LH: loop header
LB: loop body
LE: loop exit
PB: predicated region body
PF: predicated region fallthrough
CT: control target
= control target key end

     0   :  { %s586_s1 = inlined_call_operand.vmem [shape: f32[128,128], index: 1, kind: input, shape index: {}]   ;;  %s587_s0 = inlined_call_operand.vmem [shape: f32[128,128], index: 0, kind: input, shape index: {}]   ;;  %s588_s2 = inlined_call_operand.vmem [shape: f32[1,128], index: 2, kind: input, shape index: {}]   ;;  %s589_s3 = inlined_call_operand.vmem [shape: f32[128,128], index: 3, kind: output, shape index: {}]  }
   0x1   :  { %v30_v0 = vld [vmem:[%s586_s1] sm:$0xff]  ;;  %v31_v1 = vld [vmem:[%s586_s1 + $0x8] sm:$0xff]  ;;  %v32_v2 = vld [vmem:[%s586_s1 + $0x10] sm:$0xff] }
   0x2   :  { %v339_v3 = vpack.c.bf16 %v31_v1, %v30_v0  ;;  %v33_v4 = vld [vmem:[%s586_s1 + $0x18] sm:$0xff]  ;;  %v34_v6 = vld [vmem:[%s586_s1 + $0x20] sm:$0xff]  ;;  %v35_v7 = vld [vmem:[%s586_s1 + $0x28] sm:$0xff] }
   0x3   :  { %v343_v5 = vpack.c.bf16 %v33_v4, %v32_v2  ;;  %v347_v8 = vpack.c.bf16 %v35_v7, %v34_v6  ;;  %v14_v9 = vld [vmem:[%s587_s0] sm:$0xff]  ;;  %v36_v11 = vld [vmem:[%s586_s1 + $0x30] sm:$0xff]  ;;  %v37_v12 = vld [vmem:[%s586_s1 + $0x38] sm:$0xff] }
   0x4   :  { %340 = vmatprep.subr.bf16.mxu0 %v339_v3  ;;  %371 = vmatprep.subr.bf16.mxu1 %v339_v3  ;;  %v22_v10 = vld [vmem:[%s587_s0 + $0x40] sm:$0xff]  ;;  %v351_v13 = vpack.c.bf16 %v37_v12, %v36_v11  ;;  %v39_v15 = vld [vmem:[%s586_s1 + $0x48] sm:$0xff]  ;;  %v40_v17 = vld [vmem:[%s586_s1 + $0x50] sm:$0xff] }
   0x5   :  { %342 = vmatpush3.bf16.msra.mxu0 %v339_v3  ;;  %379 = vmatpush3.bf16.msra.mxu1 %v339_v3  ;;  %v38_v14 = vld [vmem:[%s586_s1 + $0x40] sm:$0xff]  ;;  %v41_v18 = vld [vmem:[%s586_s1 + $0x58] sm:$0xff]  ;;  %v43_v21 = vld [vmem:[%s586_s1 + $0x68] sm:$0xff] }
   0x6   :  { %344 = vmatprep.subr.bf16.mxu0 %v343_v5  ;;  %372 = vmatprep.subr.bf16.mxu1 %v343_v5  ;;  %v355_v16 = vpack.c.bf16 %v39_v15, %v38_v14  ;;  %v359_v19 = vpack.c.bf16 %v41_v18, %v40_v17  ;;  %v42_v20 = vld [vmem:[%s586_s1 + $0x60] sm:$0xff]  ;;  %v44_v23 = vld [vmem:[%s586_s1 + $0x70] sm:$0xff]  ;;  %v45_v24 = vld [vmem:[%s586_s1 + $0x78] sm:$0xff] }
   0x7   :  { %315 = vmatprep.mubr.f32.mxu0 %v14_v9  ;;  %327 = vmatprep.mubr.f32.mxu1 %v22_v10  ;;  %v363_v22 = vpack.c.bf16 %v43_v21, %v42_v20  ;;  %v367_v25 = vpack.c.bf16 %v45_v24, %v44_v23  ;;  %v15_v26 = vld [vmem:[%s587_s0 + $0x8] sm:$0xff]  ;;  %v16_v28 = vld [vmem:[%s587_s0 + $0x10] sm:$0xff]  ;;  %v17_v30 = vld [vmem:[%s587_s0 + $0x18] sm:$0xff] }
   0x8   :  { %v23_v27 = vld [vmem:[%s587_s0 + $0x48] sm:$0xff]  ;;  %v24_v29 = vld [vmem:[%s587_s0 + $0x50] sm:$0xff]  ;;  %v25_v31 = vld [vmem:[%s587_s0 + $0x58] sm:$0xff] }
   0x9   :  { %346 = vmatpush3.bf16.msra.mxu0 %v343_v5  ;;  %380 = vmatpush3.bf16.msra.mxu1 %v343_v5  ;;  %v18_v32 = vld [vmem:[%s587_s0 + $0x20] sm:$0xff]  ;;  %v19_v34 = vld [vmem:[%s587_s0 + $0x28] sm:$0xff]  ;;  %v20_v36 = vld [vmem:[%s587_s0 + $0x30] sm:$0xff] }
   0xa   :  { %348 = vmatprep.subr.bf16.mxu0 %v347_v8  ;;  %373 = vmatprep.subr.bf16.mxu1 %v347_v8  ;;  %v26_v33 = vld [vmem:[%s587_s0 + $0x60] sm:$0xff]  ;;  %v27_v35 = vld [vmem:[%s587_s0 + $0x68] sm:$0xff]  ;;  %v28_v37 = vld [vmem:[%s587_s0 + $0x70] sm:$0xff] }
   0xb   :  { %v21_v38 = vld [vmem:[%s587_s0 + $0x38] sm:$0xff]  ;;  %v250_v40 = vld [vmem:[%s588_s2] ss:$0 sm:$0xff] }
   0xc   :  { %v29_v39 = vld [vmem:[%s587_s0 + $0x78] sm:$0xff] }
   0xd   :  { %350 = vmatpush3.bf16.msra.mxu0 %v347_v8  ;;  %381 = vmatpush3.bf16.msra.mxu1 %v347_v8 }
   0xe   :  { %352 = vmatprep.subr.bf16.mxu0 %v351_v13  ;;  %374 = vmatprep.subr.bf16.mxu1 %v351_v13 }
  0x11   :  { %354 = vmatpush3.bf16.msra.mxu0 %v351_v13  ;;  %382 = vmatpush3.bf16.msra.mxu1 %v351_v13 }
  0x12   :  { %356 = vmatprep.subr.bf16.mxu0 %v355_v16  ;;  %375 = vmatprep.subr.bf16.mxu1 %v355_v16 }
  0x15   :  { %358 = vmatpush3.bf16.msra.mxu0 %v355_v16  ;;  %383 = vmatpush3.bf16.msra.mxu1 %v355_v16 }
  0x16   :  { %360 = vmatprep.subr.bf16.mxu0 %v359_v19  ;;  %376 = vmatprep.subr.bf16.mxu1 %v359_v19 }
  0x19   :  { %362 = vmatpush3.bf16.msra.mxu0 %v359_v19  ;;  %384 = vmatpush3.bf16.msra.mxu1 %v359_v19 }
  0x1a   :  { %364 = vmatprep.subr.bf16.mxu0 %v363_v22  ;;  %377 = vmatprep.subr.bf16.mxu1 %v363_v22 }
  0x1d   :  { %366 = vmatpush3.bf16.msra.mxu0 %v363_v22  ;;  %385 = vmatpush3.bf16.msra.mxu1 %v363_v22 }
  0x1e   :  { %368 = vmatprep.subr.bf16.mxu0 %v367_v25  ;;  %378 = vmatprep.subr.bf16.mxu1 %v367_v25 }
  0x21   :  { %370 = vmatpush3.bf16.msra.mxu0 %v367_v25  ;;  %386 = vmatpush3.bf16.msra.mxu1 %v367_v25 }
  0x24   :  { %316 = vmatmul.mubr.f32.vlgmr.msra.gmra.mrb[0].mxu0 %v15_v26  ;;  %328 = vmatmul.mubr.f32.vlgmr.msra.gmra.mrb[0].mxu1 %v23_v27 }
  0x25   :  { %318 = vmatprep.mubr.f32.mxu0 %v16_v28  ;;  %330 = vmatprep.mubr.f32.mxu1 %v24_v29 }
  0x28   :  { %319 = vmatmul.mubr.f32.gmra.mrb[2].mxu0 %v17_v30  ;;  %331 = vmatmul.mubr.f32.gmra.mrb[2].mxu1 %v25_v31 }
  0x29   :  { %321 = vmatprep.mubr.f32.mxu0 %v18_v32  ;;  %333 = vmatprep.mubr.f32.mxu1 %v26_v33 }
  0x2c   :  { %322 = vmatmul.mubr.f32.gmra.mrb[4].mxu0 %v19_v34  ;;  %334 = vmatmul.mubr.f32.gmra.mrb[4].mxu1 %v27_v35 }
  0x2d   :  { %324 = vmatprep.mubr.f32.mxu0 %v20_v36  ;;  %336 = vmatprep.mubr.f32.mxu1 %v28_v37 }
  0x30   :  { %325 = vmatmul.mubr.f32.gmra.mrb[6].mxu0 %v21_v38  ;;  %337 = vmatmul.mubr.f32.gmra.mrb[6].mxu1 %v29_v39 }
  0xf7   :  { %v317_v41 = vpop.f32.mrb[0].mxu0  ;;  %v329_v42 = vpop.f32.mrb[0].mxu1 }
  0xf8   :  { %v125_v43 = vadd.f32 %v317_v41, %v250_v40  ;;  %v165_v44 = vadd.f32 %v329_v42, %v250_v40  ;;  %v119_v45 = vpop.f32.mrb[1].mxu0  ;;  %v159_v46 = vpop.f32.mrb[1].mxu1 }
  0xf9   :  { %v120_v47 = vadd.f32 %v250_v40, %v119_v45  ;;  %v160_v48 = vadd.f32 %v250_v40, %v159_v46 }
  0xfa   :  { %v199_v49 = vmul.f32 3.0, %v125_v43  ;;  %v207_v50 = vmul.f32 3.0, %v165_v44 }
  0xfb   :  { %v198_v51 = vmul.f32 3.0, %v120_v47  ;;  %v206_v52 = vmul.f32 3.0, %v160_v48  ;;  %v320_v53 = vpop.f32.mrb[2].mxu0  ;;  %v332_v54 = vpop.f32.mrb[2].mxu1 }
  0xfc   :  { %387 = vtanh.f32 %v199_v49  ;;  %v135_v55 = vadd.f32 %v320_v53, %v250_v40  ;;  %v175_v56 = vadd.f32 %v332_v54, %v250_v40  ;;  %v129_v57 = vpop.f32.mrb[3].mxu0  ;;  %v169_v58 = vpop.f32.mrb[3].mxu1 }
  0xfd   :  { %389 = vtanh.f32 %v207_v50  ;;  %v130_v59 = vadd.f32 %v250_v40, %v129_v57  ;;  %v170_v60 = vadd.f32 %v250_v40, %v169_v58 }
  0xfe   :  { %391 = vtanh.f32 %v198_v51  ;;  %v201_v61 = vmul.f32 3.0, %v135_v55  ;;  %v209_v62 = vmul.f32 3.0, %v175_v56 }
  0xff   :  { %393 = vtanh.f32 %v206_v52  ;;  %v200_v63 = vmul.f32 3.0, %v130_v59  ;;  %v208_v0 = vmul.f32 3.0, %v170_v60  ;;  %v323_v1 = vpop.f32.mrb[4].mxu0  ;;  %v335_v2 = vpop.f32.mrb[4].mxu1 }
 0x100   :  { %395 = vtanh.f32 %v201_v61  ;;  %v145_v3 = vadd.f32 %v323_v1, %v250_v40  ;;  %v185_v4 = vadd.f32 %v335_v2, %v250_v40  ;;  %v139_v5 = vpop.f32.mrb[5].mxu0  ;;  %v179_v6 = vpop.f32.mrb[5].mxu1 }
 0x101   :  { %397 = vtanh.f32 %v209_v62  ;;  %v140_v7 = vadd.f32 %v250_v40, %v139_v5  ;;  %v180_v8 = vadd.f32 %v250_v40, %v179_v6 }
 0x102   :  { %399 = vtanh.f32 %v200_v63  ;;  %v203_v9 = vmul.f32 3.0, %v145_v3  ;;  %v211_v10 = vmul.f32 3.0, %v185_v4 }
 0x103   :  { %401 = vtanh.f32 %v208_v0  ;;  %v202_v11 = vmul.f32 3.0, %v140_v7  ;;  %v210_v12 = vmul.f32 3.0, %v180_v8  ;;  %v326_v13 = vpop.f32.mrb[6].mxu0  ;;  %v338_v14 = vpop.f32.mrb[6].mxu1 }
 0x104   :  { %403 = vtanh.f32 %v203_v9  ;;  %v155_v15 = vadd.f32 %v326_v13, %v250_v40  ;;  %v195_v16 = vadd.f32 %v338_v14, %v250_v40  ;;  %v149_v17 = vpop.f32.mrb[7].mxu0  ;;  %v189_v18 = vpop.f32.mrb[7].mxu1 }
 0x105   :  { %405 = vtanh.f32 %v211_v10  ;;  %v150_v19 = vadd.f32 %v250_v40, %v149_v17  ;;  %v190_v20 = vadd.f32 %v250_v40, %v189_v18 }
 0x106   :  { %v388_v21 = vpop.eup %387  ;;  %407 = vtanh.f32 %v202_v11  ;;  %v205_v22 = vmul.f32 3.0, %v155_v15  ;;  %v213_v23 = vmul.f32 3.0, %v195_v16 }
 0x107   :  { %v390_v24 = vpop.eup %389  ;;  %231 = vst [vmem:[%s589_s3 + $0x8] sm:$0xff] %v388_v21  ;;  %409 = vtanh.f32 %v210_v12  ;;  %v204_v25 = vmul.f32 3.0, %v150_v19  ;;  %v212_v26 = vmul.f32 3.0, %v190_v20 }
 0x108   :  { %v392_v27 = vpop.eup %391  ;;  %239 = vst [vmem:[%s589_s3 + $0x48] sm:$0xff] %v390_v24  ;;  %411 = vtanh.f32 %v205_v22 }
 0x109   :  { %v394_v28 = vpop.eup %393  ;;  %230 = vst [vmem:[%s589_s3] sm:$0xff] %v392_v27  ;;  %413 = vtanh.f32 %v213_v23 }
 0x10a   :  { %v396_v29 = vpop.eup %395  ;;  %238 = vst [vmem:[%s589_s3 + $0x40] sm:$0xff] %v394_v28  ;;  %415 = vtanh.f32 %v204_v25 }
 0x10b   :  { %v398_v30 = vpop.eup %397  ;;  %233 = vst [vmem:[%s589_s3 + $0x18] sm:$0xff] %v396_v29  ;;  %417 = vtanh.f32 %v212_v26 }
 0x10c   :  { %v400_v31 = vpop.eup %399  ;;  %241 = vst [vmem:[%s589_s3 + $0x58] sm:$0xff] %v398_v30 }
 0x10d   :  { %v402_v32 = vpop.eup %401  ;;  %232 = vst [vmem:[%s589_s3 + $0x10] sm:$0xff] %v400_v31 }
 0x10e   :  { %v404_v33 = vpop.eup %403  ;;  %240 = vst [vmem:[%s589_s3 + $0x50] sm:$0xff] %v402_v32 }
 0x10f   :  { %v406_v34 = vpop.eup %405  ;;  %235 = vst [vmem:[%s589_s3 + $0x28] sm:$0xff] %v404_v33 }
 0x110   :  { %v408_v35 = vpop.eup %407  ;;  %243 = vst [vmem:[%s589_s3 + $0x68] sm:$0xff] %v406_v34 }
 0x111   :  { %v410_v36 = vpop.eup %409  ;;  %234 = vst [vmem:[%s589_s3 + $0x20] sm:$0xff] %v408_v35 }
 0x112   :  { %v412_v37 = vpop.eup %411  ;;  %242 = vst [vmem:[%s589_s3 + $0x60] sm:$0xff] %v410_v36 }
 0x113   :  { %v414_v38 = vpop.eup %413  ;;  %237 = vst [vmem:[%s589_s3 + $0x38] sm:$0xff] %v412_v37 }
 0x114   :  { %v416_v39 = vpop.eup %415  ;;  %245 = vst [vmem:[%s589_s3 + $0x78] sm:$0xff] %v414_v38 }
 0x115   :  { %v418_v40 = vpop.eup %417  ;;  %236 = vst [vmem:[%s589_s3 + $0x30] sm:$0xff] %v416_v39 }
 0x116   :  { %244 = vst [vmem:[%s589_s3 + $0x70] sm:$0xff] %v418_v40 }

</bundles_post_ra>
